<compile_context>
chip_gen: v5e
topology: v5e:2x2
jax: 0.10.0
libtpu: 0.0.40
codegen_flags: <defaults>
</compile_context>

<pallas_src>
import jax
import jax.numpy as jnp
from jax.experimental import pallas as pl
from jax.experimental.pallas import tpu as pltpu


# --------------------------------------------------------------------------- kernel

def _injection_kernel(xl_ref, xg_ref, mt_ref, wl_ref, wg_ref, bvec_ref,
                      w1t_ref, b1r_ref, w2t_ref, out_ref):
    bb = xl_ref.shape[0]

    # hoist all resident constants out of the (small, unrolled) batch loop
    wl = wl_ref[...]            # (Cout, Cin)   bf16
    wg = wg_ref[...]            # (Cout, Cin)   bf16
    mt = mt_ref[...]            # (HgWg, HW)    bf16   bilinear upsample matrix (transposed)
    bconv = bvec_ref[:, 0:1]    # (Cout, 1)     f32    folded conv/BN bias
    b2 = bvec_ref[:, 1:2]       # (Cout, 1)     f32    CA second-fc bias
    w1t = w1t_ref[...]          # (Cout, Chid)  f32
    b1r = b1r_ref[...]          # (1, Chid)     f32
    w2t = w2t_ref[...]          # (Cout, Chid)  f32

    for i in range(bb):                                            # static unroll over batch block
        xl = xl_ref[i]                                             # (Cin, HW)   bf16
        xg = xg_ref[i]                                             # (Cin, HgWg) bf16

        # local path: folded (local_embedding+BN -> cat_conv+BN) projection, one MXU call
        local = jnp.dot(wl, xl, preferred_element_type=jnp.float32)          # (Cout, HW)

        # global path: project at LOW resolution, then upsample with one full-width matmul
        g0 = jnp.dot(wg, xg, preferred_element_type=jnp.float32)             # (Cout, HgWg)
        gup = jnp.dot(g0.astype(jnp.bfloat16), mt,
                      preferred_element_type=jnp.float32)                    # (Cout, HW)

        pre = local + gup + bconv                                            # (Cout, HW) f32

        # ChannelAttention (RCAN, squeeze=8) — kept on VPU/XLU (no N=1 MXU matmuls):
        # avgpool -> fc -> ReLU -> fc -> sigmoid -> scale
        pooled = jnp.mean(pre, axis=1, keepdims=True)                        # (Cout, 1)
        hid = jnp.sum(w1t * pooled, axis=0, keepdims=True) + b1r             # (1, Chid)
        hid = jnp.maximum(hid, 0.0)
        logits = jnp.sum(w2t * hid, axis=1, keepdims=True) + b2              # (Cout, 1)
        att = 1.0 / (1.0 + jnp.exp(-logits))                                 # exact sigmoid

        out_ref[i] = (pre * att).astype(out_ref.dtype)                       # bf16 lane-dense store


# --------------------------------------------------------------------------- helpers

def bilinear_matrix(out_size, in_size):
    """Row-interpolation matrix matching torch F.interpolate(bilinear, align_corners=False)."""
    scale = in_size / out_size
    i = jnp.arange(out_size, dtype=jnp.float32)
    src = (i + 0.5) * scale - 0.5
    src = jnp.maximum(src, 0.0)                      # PyTorch clamps negative source coords to 0
    i0 = jnp.floor(src).astype(jnp.int32)
    i0 = jnp.minimum(i0, in_size - 1)
    i1 = jnp.minimum(i0 + 1, in_size - 1)
    w1 = src - i0.astype(jnp.float32)
    w0 = 1.0 - w1
    rows = jnp.arange(out_size)
    R = jnp.zeros((out_size, in_size), jnp.float32)
    R = R.at[rows, i0].add(w0)
    R = R.at[rows, i1].add(w1)
    return R


def fold_bn(gamma, beta, mean, var, eps=1e-5):
    # BN applied with running (inference) statistics, folded to per-channel scale/shift.
    scale = gamma / jnp.sqrt(var + eps)
    bias = beta - mean * scale
    return scale[None, :], bias[None, :]


def fold_params(raw):
    """Fold embedding convs + BNs into the two halves of cat_conv (+ its BN).

    local path:  xl @ ((w_local*s_local) @ w_cat_l * s_cat)
    global path: upsample( xg @ ((w_global*s_global) @ w_cat_g * s_cat) )
                 (the 1x1 projection commutes with the spatial bilinear upsample)
    bias:        (b_local @ w_cat_l + b_global @ w_cat_g) * s_cat + b_cat
                 (exact through the upsample because every bilinear row sums to 1)
    Weights are produced channels-first and cast to bf16 for the MXU; the channel-attention
    FC weights are laid out for the VPU reduce formulation (both as (Cout, Chid)).
    """
    A_l = ((raw["w_local"] * raw["s_local"]) @ raw["w_cat_l"]) * raw["s_cat"]      # (Cin, Cout)
    A_g = ((raw["w_global"] * raw["s_global"]) @ raw["w_cat_g"]) * raw["s_cat"]    # (Cin, Cout)
    bias = ((raw["b_local"] @ raw["w_cat_l"] + raw["b_global"] @ raw["w_cat_g"])
            * raw["s_cat"] + raw["b_cat"])                                         # (1, Cout)
    return dict(
        wl=jnp.asarray(A_l.T, jnp.bfloat16),                                        # (Cout, Cin)
        wg=jnp.asarray(A_g.T, jnp.bfloat16),                                        # (Cout, Cin)
        bvec=jnp.concatenate([bias.T, raw["b_ca2"].T], axis=1).astype(jnp.float32),  # (Cout, 2)
        w1t=raw["w_ca1"].astype(jnp.float32),                                       # (Cout, Chid)
        b1r=raw["b_ca1"].astype(jnp.float32),                                       # (1, Chid)
        w2t=raw["w_ca2"].T.astype(jnp.float32),                                     # (Cout, Chid)
    )


# --------------------------------------------------------------------------- wrapper

def injection_multisum_v2(x_l, x_g, raw_params, block_batch=None):
    """x_l: (B, Cin, H, W) NCHW, x_g: (B, Cin, Hg, Wg) NCHW. Returns (B, Cout, H, W) bf16."""
    B, Cin, H, W = x_l.shape
    _, _, Hg, Wg = x_g.shape
    p = fold_params(raw_params)
    Cout = p["wl"].shape[0]
    Chid = p["w1t"].shape[1]
    HW, HgWg = H * W, Hg * Wg

    Bb = block_batch or (2 if B % 2 == 0 else 1)      # batch elements per grid step
    assert B % Bb == 0

    xl = x_l.reshape(B, Cin, HW).astype(jnp.bfloat16)       # free NCHW reshape, lane-dense rows
    xg = x_g.reshape(B, Cin, HgWg).astype(jnp.bfloat16)     # flattened low-res global features
    # Precomputed bilinear upsample matrix (applied AFTER the channel projection):
    #   gup (Cout, HW) = gproj_low (Cout, HgWg) @ MT (HgWg, HW)
    MT = jnp.kron(bilinear_matrix(H, Hg), bilinear_matrix(W, Wg)).T.astype(jnp.bfloat16)

    full2 = lambda b: (0, 0)

    out = pl.pallas_call(
        _injection_kernel,
        out_shape=jax.ShapeDtypeStruct((B, Cout, HW), jnp.bfloat16),
        grid=(B // Bb,),
        in_specs=[
            pl.BlockSpec((Bb, Cin, HW), lambda b: (b, 0, 0)),
            pl.BlockSpec((Bb, Cin, HgWg), lambda b: (b, 0, 0)),
            pl.BlockSpec((HgWg, HW), full2),
            pl.BlockSpec((Cout, Cin), full2),
            pl.BlockSpec((Cout, Cin), full2),
            pl.BlockSpec((Cout, 2), full2),
            pl.BlockSpec((Cout, Chid), full2),
            pl.BlockSpec((1, Chid), full2),
            pl.BlockSpec((Cout, Chid), full2),
        ],
        out_specs=pl.BlockSpec((Bb, Cout, HW), lambda b: (b, 0, 0)),
        compiler_params=pltpu.CompilerParams(
            dimension_semantics=("parallel",),
            # <= 48 MiB so the same config is also safe on v7x (64 MiB physical VMEM);
            # TODO(synk): per-generation tile/vmem sweep once HW tiling is added.
            vmem_limit_bytes=48 * 1024 * 1024,
        ),
    )(xl, xg, MT, p["wl"], p["wg"], p["bvec"], p["w1t"], p["b1r"], p["w2t"])

    return out.reshape(B, Cout, H, W)                 # free reshape: already NCHW order


# --------------------------------------------------------------------------- references / params

def reference_forward(x_l, x_g, raw):
    """Unfused f32 reference matching the PyTorch module (inference BN stats)."""
    B, Cin, H, W = x_l.shape
    _, _, Hg, Wg = x_g.shape
    Cout = raw["w_local"].shape[1]
    xl = jnp.transpose(x_l, (0, 2, 3, 1)).reshape(B, H * W, Cin)
    xg = jnp.transpose(x_g, (0, 2, 3, 1)).reshape(B, Hg * Wg, Cin)
    local = (xl @ raw["w_local"]) * raw["s_local"] + raw["b_local"]
    gfeat = (xg @ raw["w_global"]) * raw["s_global"] + raw["b_global"]
    M = jnp.kron(bilinear_matrix(H, Hg), bilinear_matrix(W, Wg))          # (HW, HgWg)
    gup = jnp.einsum("pn,bnc->bpc", M, gfeat)
    pre = (gup @ raw["w_cat_g"] + local @ raw["w_cat_l"]) * raw["s_cat"] + raw["b_cat"]
    pooled = jnp.mean(pre, axis=1, keepdims=True)
    hid = jnp.maximum(pooled @ raw["w_ca1"] + raw["b_ca1"], 0.0)
    att = jax.nn.sigmoid(hid @ raw["w_ca2"] + raw["b_ca2"])
    out = pre * att
    return jnp.transpose(out.reshape(B, H, W, Cout), (0, 3, 1, 2))


def folded_reference_f32(x_l, x_g, raw):
    """Same algebra as the kernel (fold + project-then-upsample) but pure f32, no Pallas.
    Used to validate fold_params at tight tolerance, independent of bf16 effects."""
    B, Cin, H, W = x_l.shape
    _, _, Hg, Wg = x_g.shape
    A_l = ((raw["w_local"] * raw["s_local"]) @ raw["w_cat_l"]) * raw["s_cat"]
    A_g = ((raw["w_global"] * raw["s_global"]) @ raw["w_cat_g"]) * raw["s_cat"]
    bias = ((raw["b_local"] @ raw["w_cat_l"] + raw["b_global"] @ raw["w_cat_g"])
            * raw["s_cat"] + raw["b_cat"])
    MT = jnp.kron(bilinear_matrix(H, Hg), bilinear_matrix(W, Wg)).T       # (HgWg, HW)
    xl = x_l.reshape(B, Cin, H * W)
    xg = x_g.reshape(B, Cin, Hg * Wg)
    local = jnp.einsum("oc,bcp->bop", A_l.T, xl)
    g0 = jnp.einsum("oc,bcn->bon", A_g.T, xg)
    gup = jnp.einsum("bon,np->bop", g0, MT)
    pre = local + gup + bias.T[None]
    pooled = pre.mean(axis=2, keepdims=True)                              # (B, Cout, 1)
    hid = jnp.maximum(jnp.einsum("oh,bol->bhl", raw["w_ca1"], pooled) + raw["b_ca1"].T[None], 0.0)
    logits = jnp.einsum("ho,bhl->bol", raw["w_ca2"], hid) + raw["b_ca2"].T[None]
    att = jax.nn.sigmoid(logits)
    return (pre * att).reshape(B, -1, H, W)


def make_params(key, inp, oup, squeeze_factor=8):
    chid = oup // squeeze_factor
    ks = jax.random.split(key, 8)

    def conv_bn(k, cin, cout):
        kw, kg, kb, km, kv = jax.random.split(k, 5)
        w = 0.1 * jax.random.normal(kw, (cin, cout), jnp.float32)      # (Cin, Cout) == conv W^T
        gamma = 1.0 + 0.1 * jax.random.normal(kg, (cout,), jnp.float32)
        beta = 0.1 * jax.random.normal(kb, (cout,), jnp.float32)
        mean = 0.1 * jax.random.normal(km, (cout,), jnp.float32)
        var = 0.5 + 0.5 * jax.random.uniform(kv, (cout,), jnp.float32)
        scale, bias = fold_bn(gamma, beta, mean, var)
        return w, scale, bias

    w_l, s_l, b_l = conv_bn(ks[0], inp, oup)
    w_g, s_g, b_g = conv_bn(ks[1], inp, oup)
    w_c, s_c, b_c = conv_bn(ks[2], 2 * oup, oup)
    # cat order in torch.cat is [global_feat, local_feat]
    w_cat_g, w_cat_l = w_c[:oup, :], w_c[oup:, :]

    w_ca1 = 0.1 * jax.random.normal(ks[3], (oup, chid), jnp.float32)
    b_ca1 = 0.1 * jax.random.normal(ks[4], (1, chid), jnp.float32)
    w_ca2 = 0.1 * jax.random.normal(ks[5], (chid, oup), jnp.float32)
    b_ca2 = 0.1 * jax.random.normal(ks[6], (1, oup), jnp.float32)

    return dict(
        w_local=w_l, s_local=s_l, b_local=b_l,
        w_global=w_g, s_global=s_g, b_global=b_g,
        w_cat_g=w_cat_g, w_cat_l=w_cat_l, s_cat=s_c, b_cat=b_c,
        w_ca1=w_ca1, b_ca1=b_ca1, w_ca2=w_ca2, b_ca2=b_ca2,
    )


if __name__ == "__main__":
    key = jax.random.PRNGKey(0)
    k_xl, k_xg, k_p = jax.random.split(key, 3)

    B, inp, oup = 2, 32, 64
    H = W = 16          # local (high-res) spatial size
    Hg = Wg = 8         # global (low-res) spatial size

    x_l = jax.random.normal(k_xl, (B, inp, H, W), jnp.float32)   # NCHW, like PyTorch
    x_g = jax.random.normal(k_xg, (B, inp, Hg, Wg), jnp.float32)

    raw = make_params(k_p, inp, oup, squeeze_factor=8)

    out = injection_multisum_v2(x_l, x_g, raw)
    out = jax.block_until_ready(out)
    assert out.shape == (B, oup, H, W)
    assert jnp.all(jnp.isfinite(out.astype(jnp.float32)))

    # references computed at full f32 matmul precision
    with jax.default_matmul_precision("float32"):
        ref = reference_forward(x_l, x_g, raw)
        fold_chk = folded_reference_f32(x_l, x_g, raw)

    # tight-tolerance check: the weight/BN folding + project-then-upsample algebra is exact
    assert jnp.allclose(fold_chk, ref, rtol=1e-4, atol=1e-4)

    # looser check of the bf16 fused kernel against the unfused f32 reference
    assert jnp.allclose(out.astype(jnp.float32), ref, rtol=1e-1, atol=1e-1)

    print("KERNEL_OK")
</pallas_src>

<mosaic_0001>
module attributes {stable_mosaic.version = 11 : i64} {
  func.func @_injection_kernel(%arg0: i32, %arg1: memref<2x32x256xbf16, #tpu.memory_space<vmem>>, %arg2: memref<2x32x64xbf16, #tpu.memory_space<vmem>>, %arg3: memref<64x256xbf16, #tpu.memory_space<vmem>>, %arg4: memref<64x32xbf16, #tpu.memory_space<vmem>>, %arg5: memref<64x32xbf16, #tpu.memory_space<vmem>>, %arg6: memref<64x2xf32, #tpu.memory_space<vmem>>, %arg7: memref<64x8xf32, #tpu.memory_space<vmem>>, %arg8: memref<1x8xf32, #tpu.memory_space<vmem>>, %arg9: memref<64x8xf32, #tpu.memory_space<vmem>>, %arg10: memref<2x64x256xbf16, #tpu.memory_space<vmem>>) attributes {dimension_semantics = [#tpu.dimension_semantics<parallel>], iteration_bounds = array<i64: 1>, scalar_prefetch = 0 : i64, scratch_operands = 0 : i64, tpu.core_type = #tpu.core_type<tc>, window_params = [{transform_indices = @transform_0, window_bounds = array<i64: 2, 32, 256>}, {transform_indices = @transform_1, window_bounds = array<i64: 2, 32, 64>}, {pipeline_mode = #tpu.pipeline_mode<synchronous>, transform_indices = @transform_2, window_bounds = array<i64: 64, 256>}, {pipeline_mode = #tpu.pipeline_mode<synchronous>, transform_indices = @transform_3, window_bounds = array<i64: 64, 32>}, {pipeline_mode = #tpu.pipeline_mode<synchronous>, transform_indices = @transform_4, window_bounds = array<i64: 64, 32>}, {pipeline_mode = #tpu.pipeline_mode<synchronous>, transform_indices = @transform_5, window_bounds = array<i64: 64, 2>}, {pipeline_mode = #tpu.pipeline_mode<synchronous>, transform_indices = @transform_6, window_bounds = array<i64: 64, 8>}, {pipeline_mode = #tpu.pipeline_mode<synchronous>, transform_indices = @transform_7, window_bounds = array<i64: 1, 8>}, {pipeline_mode = #tpu.pipeline_mode<synchronous>, transform_indices = @transform_8, window_bounds = array<i64: 64, 8>}, {transform_indices = @transform_9, window_bounds = array<i64: 2, 64, 256>}]} {
    %c0 = arith.constant 0 : index
    %c0_0 = arith.constant 0 : index
    %0 = vector.load %arg4[%c0, %c0_0] : memref<64x32xbf16, #tpu.memory_space<vmem>>, vector<64x32xbf16>
    %c0_1 = arith.constant 0 : index
    %c0_2 = arith.constant 0 : index
    %1 = vector.load %arg5[%c0_1, %c0_2] : memref<64x32xbf16, #tpu.memory_space<vmem>>, vector<64x32xbf16>
    %c0_3 = arith.constant 0 : index
    %c0_4 = arith.constant 0 : index
    %2 = vector.load %arg3[%c0_3, %c0_4] : memref<64x256xbf16, #tpu.memory_space<vmem>>, vector<64x256xbf16>
    %c0_5 = arith.constant 0 : index
    %c0_6 = arith.constant 0 : index
    %3 = vector.load %arg6[%c0_5, %c0_6] : memref<64x2xf32, #tpu.memory_space<vmem>>, vector<64x1xf32>
    %c0_7 = arith.constant 0 : index
    %c1 = arith.constant 1 : index
    %4 = vector.load %arg6[%c0_7, %c1] : memref<64x2xf32, #tpu.memory_space<vmem>>, vector<64x1xf32>
    %c0_8 = arith.constant 0 : index
    %c0_9 = arith.constant 0 : index
    %5 = vector.load %arg7[%c0_8, %c0_9] : memref<64x8xf32, #tpu.memory_space<vmem>>, vector<64x8xf32>
    %c0_10 = arith.constant 0 : index
    %c0_11 = arith.constant 0 : index
    %6 = vector.load %arg8[%c0_10, %c0_11] : memref<1x8xf32, #tpu.memory_space<vmem>>, vector<1x8xf32>
    %c0_12 = arith.constant 0 : index
    %c0_13 = arith.constant 0 : index
    %7 = vector.load %arg9[%c0_12, %c0_13] : memref<64x8xf32, #tpu.memory_space<vmem>>, vector<64x8xf32>
    %c0_14 = arith.constant 0 : index
    %c0_15 = arith.constant 0 : index
    %c0_16 = arith.constant 0 : index
    %8 = vector.load %arg1[%c0_14, %c0_15, %c0_16] : memref<2x32x256xbf16, #tpu.memory_space<vmem>>, vector<1x32x256xbf16>
    %9 = vector.shape_cast %8 : vector<1x32x256xbf16> to vector<32x256xbf16>
    %c0_17 = arith.constant 0 : index
    %c0_18 = arith.constant 0 : index
    %c0_19 = arith.constant 0 : index
    %10 = vector.load %arg2[%c0_17, %c0_18, %c0_19] : memref<2x32x64xbf16, #tpu.memory_space<vmem>>, vector<1x32x64xbf16>
    %11 = vector.shape_cast %10 : vector<1x32x64xbf16> to vector<32x64xbf16>
    %cst = arith.constant dense<0.000000e+00> : vector<64x256xf32>
    %12 = tpu.matmul %0, %9, %cst {dimension_numbers = #tpu.dot_dimension_numbers<[1], [0], [0], [1], [0, 0, 1, 1], [], []>} : vector<64x32xbf16>, vector<32x256xbf16>, vector<64x256xf32> -> vector<64x256xf32>
    %cst_20 = arith.constant dense<0.000000e+00> : vector<64x64xf32>
    %13 = tpu.matmul %1, %11, %cst_20 {dimension_numbers = #tpu.dot_dimension_numbers<[1], [0], [0], [1], [0, 0, 1, 1], [], []>} : vector<64x32xbf16>, vector<32x64xbf16>, vector<64x64xf32> -> vector<64x64xf32>
    %14 = arith.truncf %13 : vector<64x64xf32> to vector<64x64xbf16>
    %cst_21 = arith.constant dense<0.000000e+00> : vector<64x256xf32>
    %15 = tpu.matmul %14, %2, %cst_21 {dimension_numbers = #tpu.dot_dimension_numbers<[1], [0], [0], [1], [0, 0, 1, 1], [], []>} : vector<64x64xbf16>, vector<64x256xbf16>, vector<64x256xf32> -> vector<64x256xf32>
    %16 = arith.addf %12, %15 : vector<64x256xf32>
    %17 = vector.broadcast %3 : vector<64x1xf32> to vector<64x256xf32>
    %18 = arith.addf %16, %17 : vector<64x256xf32>
    %cst_22 = arith.constant dense<0.000000e+00> : vector<64xf32>
    %19 = vector.multi_reduction <add>, %18, %cst_22 [1] : vector<64x256xf32> to vector<64xf32>
    %20 = vector.shape_cast %19 : vector<64xf32> to vector<64x1xf32>
    %cst_23 = arith.constant 2.560000e+02 : f32
    %21 = vector.broadcast %cst_23 : f32 to vector<64x1xf32>
    %22 = arith.divf %20, %21 : vector<64x1xf32>
    %23 = vector.broadcast %22 : vector<64x1xf32> to vector<64x8xf32>
    %24 = arith.mulf %5, %23 : vector<64x8xf32>
    %cst_24 = arith.constant dense<0.000000e+00> : vector<8xf32>
    %25 = vector.multi_reduction <add>, %24, %cst_24 [0] : vector<64x8xf32> to vector<8xf32>
    %26 = vector.shape_cast %25 : vector<8xf32> to vector<1x8xf32>
    %27 = arith.addf %26, %6 : vector<1x8xf32>
    %cst_25 = arith.constant 0.000000e+00 : f32
    %28 = vector.broadcast %cst_25 : f32 to vector<1x8xf32>
    %29 = arith.maximumf %27, %28 : vector<1x8xf32>
    %30 = vector.broadcast %29 : vector<1x8xf32> to vector<64x8xf32>
    %31 = arith.mulf %7, %30 : vector<64x8xf32>
    %cst_26 = arith.constant dense<0.000000e+00> : vector<64xf32>
    %32 = vector.multi_reduction <add>, %31, %cst_26 [1] : vector<64x8xf32> to vector<64xf32>
    %33 = vector.shape_cast %32 : vector<64xf32> to vector<64x1xf32>
    %34 = arith.addf %33, %4 : vector<64x1xf32>
    %cst_27 = arith.constant 0.000000e+00 : f32
    %35 = vector.broadcast %cst_27 : f32 to vector<64x1xf32>
    %36 = arith.subf %35, %34 : vector<64x1xf32>
    %37 = math.exp %36 : vector<64x1xf32>
    %cst_28 = arith.constant 1.000000e+00 : f32
    %38 = vector.broadcast %cst_28 : f32 to vector<64x1xf32>
    %39 = arith.addf %38, %37 : vector<64x1xf32>
    %cst_29 = arith.constant 1.000000e+00 : f32
    %40 = vector.broadcast %cst_29 : f32 to vector<64x1xf32>
    %41 = arith.divf %40, %39 : vector<64x1xf32>
    %42 = vector.broadcast %41 : vector<64x1xf32> to vector<64x256xf32>
    %43 = arith.mulf %18, %42 : vector<64x256xf32>
    %44 = arith.truncf %43 : vector<64x256xf32> to vector<64x256xbf16>
    %c0_30 = arith.constant 0 : index
    %c0_31 = arith.constant 0 : index
    %c0_32 = arith.constant 0 : index
    %45 = vector.load %arg10[%c0_30, %c0_31, %c0_32] : memref<2x64x256xbf16, #tpu.memory_space<vmem>>, vector<1x64x256xbf16>
    %46 = vector.shape_cast %45 : vector<1x64x256xbf16> to vector<64x256xbf16>
    %47 = vector.shape_cast %44 : vector<64x256xbf16> to vector<1x64x256xbf16>
    tpu.vector_store %arg10[%c0_30, %c0_31, %c0_32], %47 {strides = array<i32>} : memref<2x64x256xbf16, #tpu.memory_space<vmem>>, vector<1x64x256xbf16>,
    %c1_33 = arith.constant 1 : index
    %c0_34 = arith.constant 0 : index
    %c0_35 = arith.constant 0 : index
    %48 = vector.load %arg1[%c1_33, %c0_34, %c0_35] : memref<2x32x256xbf16, #tpu.memory_space<vmem>>, vector<1x32x256xbf16>
    %49 = vector.shape_cast %48 : vector<1x32x256xbf16> to vector<32x256xbf16>
    %c1_36 = arith.constant 1 : index
    %c0_37 = arith.constant 0 : index
    %c0_38 = arith.constant 0 : index
    %50 = vector.load %arg2[%c1_36, %c0_37, %c0_38] : memref<2x32x64xbf16, #tpu.memory_space<vmem>>, vector<1x32x64xbf16>
    %51 = vector.shape_cast %50 : vector<1x32x64xbf16> to vector<32x64xbf16>
    %cst_39 = arith.constant dense<0.000000e+00> : vector<64x256xf32>
    %52 = tpu.matmul %0, %49, %cst_39 {dimension_numbers = #tpu.dot_dimension_numbers<[1], [0], [0], [1], [0, 0, 1, 1], [], []>} : vector<64x32xbf16>, vector<32x256xbf16>, vector<64x256xf32> -> vector<64x256xf32>
    %cst_40 = arith.constant dense<0.000000e+00> : vector<64x64xf32>
    %53 = tpu.matmul %1, %51, %cst_40 {dimension_numbers = #tpu.dot_dimension_numbers<[1], [0], [0], [1], [0, 0, 1, 1], [], []>} : vector<64x32xbf16>, vector<32x64xbf16>, vector<64x64xf32> -> vector<64x64xf32>
    %54 = arith.truncf %53 : vector<64x64xf32> to vector<64x64xbf16>
    %cst_41 = arith.constant dense<0.000000e+00> : vector<64x256xf32>
    %55 = tpu.matmul %54, %2, %cst_41 {dimension_numbers = #tpu.dot_dimension_numbers<[1], [0], [0], [1], [0, 0, 1, 1], [], []>} : vector<64x64xbf16>, vector<64x256xbf16>, vector<64x256xf32> -> vector<64x256xf32>
    %56 = arith.addf %52, %55 : vector<64x256xf32>
    %57 = vector.broadcast %3 : vector<64x1xf32> to vector<64x256xf32>
    %58 = arith.addf %56, %57 : vector<64x256xf32>
    %cst_42 = arith.constant dense<0.000000e+00> : vector<64xf32>
    %59 = vector.multi_reduction <add>, %58, %cst_42 [1] : vector<64x256xf32> to vector<64xf32>
    %60 = vector.shape_cast %59 : vector<64xf32> to vector<64x1xf32>
    %cst_43 = arith.constant 2.560000e+02 : f32
    %61 = vector.broadcast %cst_43 : f32 to vector<64x1xf32>
    %62 = arith.divf %60, %61 : vector<64x1xf32>
    %63 = vector.broadcast %62 : vector<64x1xf32> to vector<64x8xf32>
    %64 = arith.mulf %5, %63 : vector<64x8xf32>
    %cst_44 = arith.constant dense<0.000000e+00> : vector<8xf32>
    %65 = vector.multi_reduction <add>, %64, %cst_44 [0] : vector<64x8xf32> to vector<8xf32>
    %66 = vector.shape_cast %65 : vector<8xf32> to vector<1x8xf32>
    %67 = arith.addf %66, %6 : vector<1x8xf32>
    %cst_45 = arith.constant 0.000000e+00 : f32
    %68 = vector.broadcast %cst_45 : f32 to vector<1x8xf32>
    %69 = arith.maximumf %67, %68 : vector<1x8xf32>
    %70 = vector.broadcast %69 : vector<1x8xf32> to vector<64x8xf32>
    %71 = arith.mulf %7, %70 : vector<64x8xf32>
    %cst_46 = arith.constant dense<0.000000e+00> : vector<64xf32>
    %72 = vector.multi_reduction <add>, %71, %cst_46 [1] : vector<64x8xf32> to vector<64xf32>
    %73 = vector.shape_cast %72 : vector<64xf32> to vector<64x1xf32>
    %74 = arith.addf %73, %4 : vector<64x1xf32>
    %cst_47 = arith.constant 0.000000e+00 : f32
    %75 = vector.broadcast %cst_47 : f32 to vector<64x1xf32>
    %76 = arith.subf %75, %74 : vector<64x1xf32>
    %77 = math.exp %76 : vector<64x1xf32>
    %cst_48 = arith.constant 1.000000e+00 : f32
    %78 = vector.broadcast %cst_48 : f32 to vector<64x1xf32>
    %79 = arith.addf %78, %77 : vector<64x1xf32>
    %cst_49 = arith.constant 1.000000e+00 : f32
    %80 = vector.broadcast %cst_49 : f32 to vector<64x1xf32>
    %81 = arith.divf %80, %79 : vector<64x1xf32>
    %82 = vector.broadcast %81 : vector<64x1xf32> to vector<64x256xf32>
    %83 = arith.mulf %58, %82 : vector<64x256xf32>
    %84 = arith.truncf %83 : vector<64x256xf32> to vector<64x256xbf16>
    %c1_50 = arith.constant 1 : index
    %c0_51 = arith.constant 0 : index
    %c0_52 = arith.constant 0 : index
    %85 = vector.load %arg10[%c1_50, %c0_51, %c0_52] : memref<2x64x256xbf16, #tpu.memory_space<vmem>>, vector<1x64x256xbf16>
    %86 = vector.shape_cast %85 : vector<1x64x256xbf16> to vector<64x256xbf16>
    %87 = vector.shape_cast %84 : vector<64x256xbf16> to vector<1x64x256xbf16>
    tpu.vector_store %arg10[%c1_50, %c0_51, %c0_52], %87 {strides = array<i32>} : memref<2x64x256xbf16, #tpu.memory_space<vmem>>, vector<1x64x256xbf16>,
    return
  }
  func.func @transform_0(%arg0: i32) -> (i32, i32, i32) {
    %c0_i32 = arith.constant 0 : i32
    %c0_i32_0 = arith.constant 0 : i32
    %c0_i32_1 = arith.constant 0 : i32
    return %arg0, %c0_i32, %c0_i32_0 : i32, i32, i32
  }
  func.func @transform_1(%arg0: i32) -> (i32, i32, i32) {
    %c0_i32 = arith.constant 0 : i32
    %c0_i32_0 = arith.constant 0 : i32
    %c0_i32_1 = arith.constant 0 : i32
    return %arg0, %c0_i32, %c0_i32_0 : i32, i32, i32
  }
  func.func @transform_2(%arg0: i32) -> (i32, i32) {
    %c0_i32 = arith.constant 0 : i32
    %c0_i32_0 = arith.constant 0 : i32
    %c0_i32_1 = arith.constant 0 : i32
    return %c0_i32, %c0_i32_0 : i32, i32
  }
  func.func @transform_3(%arg0: i32) -> (i32, i32) {
    %c0_i32 = arith.constant 0 : i32
    %c0_i32_0 = arith.constant 0 : i32
    %c0_i32_1 = arith.constant 0 : i32
    return %c0_i32, %c0_i32_0 : i32, i32
  }
  func.func @transform_4(%arg0: i32) -> (i32, i32) {
    %c0_i32 = arith.constant 0 : i32
    %c0_i32_0 = arith.constant 0 : i32
    %c0_i32_1 = arith.constant 0 : i32
    return %c0_i32, %c0_i32_0 : i32, i32
  }
  func.func @transform_5(%arg0: i32) -> (i32, i32) {
    %c0_i32 = arith.constant 0 : i32
    %c0_i32_0 = arith.constant 0 : i32
    %c0_i32_1 = arith.constant 0 : i32
    return %c0_i32, %c0_i32_0 : i32, i32
  }
  func.func @transform_6(%arg0: i32) -> (i32, i32) {
    %c0_i32 = arith.constant 0 : i32
    %c0_i32_0 = arith.constant 0 : i32
    %c0_i32_1 = arith.constant 0 : i32
    return %c0_i32, %c0_i32_0 : i32, i32
  }
  func.func @transform_7(%arg0: i32) -> (i32, i32) {
    %c0_i32 = arith.constant 0 : i32
    %c0_i32_0 = arith.constant 0 : i32
    %c0_i32_1 = arith.constant 0 : i32
    return %c0_i32, %c0_i32_0 : i32, i32
  }
  func.func @transform_8(%arg0: i32) -> (i32, i32) {
    %c0_i32 = arith.constant 0 : i32
    %c0_i32_0 = arith.constant 0 : i32
    %c0_i32_1 = arith.constant 0 : i32
    return %c0_i32, %c0_i32_0 : i32, i32
  }
  func.func @transform_9(%arg0: i32) -> (i32, i32, i32) {
    %c0_i32 = arith.constant 0 : i32
    %c0_i32_0 = arith.constant 0 : i32
    %c0_i32_1 = arith.constant 0 : i32
    return %arg0, %c0_i32, %c0_i32_0 : i32, i32, i32
  }
}

</mosaic_0001>

<bundles_post_ra>
// kernel: tpu_custom_call.1
= control target key start
LH: loop header
LB: loop body
LE: loop exit
PB: predicated region body
PF: predicated region fallthrough
CT: control target
= control target key end

     0   :  { %s2540_s0 = inlined_call_operand.vmem [shape: bf16[2,32,256], index: 0, kind: input, shape index: {}]   ;;  %s2541_s1 = inlined_call_operand.vmem [shape: bf16[2,32,64], index: 1, kind: input, shape index: {}]   ;;  %s2542_s2 = inlined_call_operand.vmem [shape: bf16[64,256], index: 2, kind: input, shape index: {}]   ;;  %s2543_s3 = inlined_call_operand.vmem [shape: bf16[64,32], index: 3, kind: input, shape index: {}]   ;;  %s2544_s4 = inlined_call_operand.vmem [shape: bf16[64,32], index: 4, kind: input, shape index: {}]   ;;  %s2545_s5 = inlined_call_operand.vmem [shape: f32[64,2], index: 5, kind: input, shape index: {}]   ;;  %s2546_s6 = inlined_call_operand.vmem [shape: f32[64,8], index: 6, kind: input, shape index: {}]   ;;  %s2547_s7 = inlined_call_operand.vmem [shape: f32[1,8], index: 7, kind: input, shape index: {}]   ;;  %s2548_s8 = inlined_call_operand.vmem [shape: f32[64,8], index: 8, kind: input, shape index: {}]   ;;  %s2549_s9 = inlined_call_operand.hbm [shape: bf16[2,64,256], index: 9, kind: output, shape index: {}]  }
   0x1   :  { %v1529_v0 = vld [vmem:[%s2541_s1 + $0x8] sm:$0xff]  ;;  %v1442_v1 = vld [vmem:[%s2540_s0 + $0x10] sm:$0xf]  ;;  %v1527_v2 = vld [vmem:[%s2540_s0 + $0x14] sm:$0xf0] }
   0x2   :  { %v1434_v3 = vld [vmem:[%s2540_s0] sm:$0xf]  ;;  %142 = vmatpush.bf16.msra.mxu0 %v1529_v0  ;;  %1536 = vmatpush.bf16.msra.mxu1 %v1529_v0  ;;  %v1723_v5 = vor.u32 %v1527_v2, %v1442_v1  ;;  %v1525_v6 = vld [vmem:[%s2540_s0 + $0x4] sm:$0xf0] }
   0x3   :  { %v1528_v4 = vld [vmem:[%s2541_s1] sm:$0xff]  ;;  %v1729_v7 = vor.u32 %v1525_v6, %v1434_v3 }
   0x4   :  { %1538 = vmatpush.bf16.msra.mxu3 %v1723_v5 }
   0x5   :  { %14 = vsyncpa [#allocation3], 0  ;;  %v1512_v8 = vld [vmem:[%s2544_s4] sm:$0xff]  ;;  %v1513_v9 = vld [vmem:[%s2544_s4 + $0x8] sm:$0xff]  ;;  %vm123_vm0 = vcmask 261120   ;;  %v1652_v52 = vmov 0  }
   0x6   :  { %143 = vmatpush.bf16.msra.mxu0 %v1528_v4  ;;  %1537 = vmatpush.bf16.msra.mxu1 %v1528_v4  ;;  %v1535_v10 = vld [vmem:[%s2541_s1 + $0x18] sm:$0xff]  ;;  %v1743_v11 = vld [vmem:[%s2543_s3 + $0x8] sm:$0xff]  ;;  %v1534_v12 = vld [vmem:[%s2541_s1 + $0x10] sm:$0xff]  ;;  %vm209_vm1 = vcmask 523264   ;;  %vm493_vm3 = vcmask 64512   ;;  %s1656_s1 = smov 128  }
   0x7   :  { %v1514_v13 = vld [vmem:[%s2544_s4 + $0x10] sm:$0xff]  ;;  %v1515_v15 = vld [vmem:[%s2544_s4 + $0x18] sm:$0xff]  ;;  %v1394_v22 = vld [vmem:[%s2542_s2 + $0x20] sm:$0xf]  ;;  %1546 = vset.pattern.permute.xlu0 %v1652_v52  ;;  %1547 = vset.pattern.permute.xlu1 %v1652_v52 }
   0x8   :  { %1539 = vmatpush.bf16.msra.mxu3 %v1729_v7  ;;  %v1759_v14 = vld [vmem:[%s2543_s3 + $0x10] sm:$0xff]  ;;  %v1770_v16 = vld [vmem:[%s2543_s3 + $0x18] sm:$0xff]  ;;  %v1521_v23 = vld [vmem:[%s2542_s2 + $0x24] sm:$0xf0]  ;;  %1548 = vset.pattern.permute.xlu2 %v1652_v52 }
   0x9   :  { %1372 = vmatmul.msk.bf16.vlgmr.msra.gmra.mxu0 %vm123_vm0, %v1512_v8  ;;  %1373 = vmatmul.msk.bf16.vlgmr.msra.gmra.mxu1 %vm123_vm0, %v1513_v9  ;;  %v1402_v17 = vld [vmem:[%s2542_s2 + $0x30] sm:$0xf]  ;;  %v1523_v18 = vld [vmem:[%s2542_s2 + $0x34] sm:$0xf0]  ;;  %v1522_v19 = vld [vmem:[%s2542_s2 + $0x34] sm:$0xf]  ;;  %v1395_v25 = vor.u32 %v1521_v23, %v1394_v22 }
   0xa   :  { %v1403_v20 = vor.u32 %v1523_v18, %v1402_v17  ;;  %v1404_v21 = vld [vmem:[%s2542_s2 + $0x38] sm:$0xf0]  ;;  %v1520_v26 = vld [vmem:[%s2542_s2 + $0x24] sm:$0xf]  ;;  %v1396_v27 = vld [vmem:[%s2542_s2 + $0x28] sm:$0xf0] }
   0xb   :  { %1449 = vmatmul.msk.bf16.vlgmr.msra.gmra.mxu3 %vm123_vm0, %v1743_v11  ;;  %v1795_v24 = vor.u32 %v1522_v19, %v1404_v21  ;;  %v1805_v28 = vor.u32 %v1520_v26, %v1396_v27  ;;  %v1386_v29 = vld [vmem:[%s2542_s2 + $0x10] sm:$0xf]  ;;  %v1519_v30 = vld [vmem:[%s2542_s2 + $0x14] sm:$0xf0]  ;;  %v1518_v31 = vld [vmem:[%s2542_s2 + $0x14] sm:$0xf] }
   0xc   :  { %810 = vmatpush.bf16.msrb.mxu3 %v1535_v10  ;;  %226 = vmatpush.bf16.msrb.mxu1 %v1403_v20  ;;  %v1387_v32 = vor.u32 %v1519_v30, %v1386_v29  ;;  %v1388_v33 = vld [vmem:[%s2542_s2 + $0x18] sm:$0xf0]  ;;  %v1526_v34 = vld [vmem:[%s2540_s0 + $0x14] sm:$0xf]  ;;  %v1378_v38 = vld [vmem:[%s2542_s2] sm:$0xf] }
   0xd   :  { %255 = vmatpush.bf16.msra.mxu2 %v1795_v24  ;;  %v1444_v35 = vld [vmem:[%s2540_s0 + $0x18] sm:$0xf0]  ;;  %v1391_v36 = vor.u32 %v1518_v31, %v1388_v33  ;;  %v1517_v39 = vld [vmem:[%s2542_s2 + $0x4] sm:$0xf0]  ;;  %v1516_v40 = vld [vmem:[%s2542_s2 + $0x4] sm:$0xf] }
   0xe   :  { %v1447_v37 = vor.u32 %v1526_v34, %v1444_v35  ;;  %v1379_v41 = vor.u32 %v1517_v39, %v1378_v38  ;;  %v1380_v42 = vld [vmem:[%s2542_s2 + $0x8] sm:$0xf0]  ;;  %v1524_v43 = vld [vmem:[%s2540_s0 + $0x4] sm:$0xf]  ;;  %v1532_v48 = vld [vmem:[%s2540_s0 + $0x34] sm:$0xf] }
   0xf   :  { %v1436_v44 = vld [vmem:[%s2540_s0 + $0x8] sm:$0xf0]  ;;  %v1383_v45 = vor.u32 %v1516_v40, %v1380_v42  ;;  %v1848_v47 = vld [vmem:[%s2543_s3] sm:$0xff]  ;;  %v1496_v49 = vld [vmem:[%s2540_s0 + $0x38] sm:$0xf0]  ;;  %s1657_s3 = smov 8  }
  0x10   :  { %811 = vmatpush.bf16.msrb.mxu3 %v1534_v12  ;;  %227 = vmatpush.bf16.msrb.mxu1 %v1395_v25  ;;  %v1439_v46 = vor.u32 %v1524_v43, %v1436_v44  ;;  %v1863_v50 = vld [vmem:[%s2545_s5] sm:$0xff]  ;;  %v1499_v51 = vor.u32 %v1532_v48, %v1496_v49  ;;  %v1494_v53 = vld [vmem:[%s2540_s0 + $0x30] sm:$0xf]  ;;  %v1533_v54 = vld [vmem:[%s2540_s0 + $0x34] sm:$0xf0] }
  0x11   :  { %256 = vmatpush.bf16.msra.mxu2 %v1805_v28  ;;  %367 = vmatpush.bf16.msrb.mxu0 %v1447_v37  ;;  %v1495_v55 = vor.u32 %v1533_v54, %v1494_v53  ;;  %v1877_v56 = vld [vmem:[%s2545_s5 + $0x10] sm:$0xff]  ;;  %v1883_v58 = vld [vmem:[%s2545_s5 + $0x8] sm:$0xff]  ;;  %v1893_v63 = vld [vmem:[%s2545_s5 + $0x18] sm:$0xff] }
  0x12   :  { %392 = vperm.xlu0 %1546, %v1863_v50   ;;  %402 = vperm.xlu1 %1547, %v1877_v56   ;;  %v1488_v6 = vld [vmem:[%s2540_s0 + $0x28] sm:$0xf0]  ;;  %v1923_v10 = vld [vmem:[%s2545_s5 + $0x30] sm:$0xff]  ;;  %v1937_v19 = vld [vmem:[%s2545_s5 + $0x20] sm:$0xff] }
  0x13   :  { %412 = vperm.xlu2 %1548, %v1937_v19   ;;  %v1953_v23 = vld [vmem:[%s2545_s5 + $0x28] sm:$0xff] }
  0x14   :  { %228 = vmatpush.bf16.msrb.mxu1 %v1387_v32  ;;  %962 = vmatpush.bf16.msra.mxu3 %v1499_v51 }
  0x15   :  { %257 = vmatpush.bf16.msra.mxu2 %v1391_v36  ;;  %368 = vmatpush.bf16.msrb.mxu0 %v1439_v46 }
  0x18   :  { %229 = vmatpush.bf16.msrb.mxu1 %v1379_v41 }
  0x19   :  { %1374 = vmatmul.msk.bf16.gmra.mxu1 %vm123_vm0, %v1514_v13  ;;  %258 = vmatpush.bf16.msra.mxu2 %v1383_v45 }
  0x1a   :  { %1452 = vmatmul.msk.bf16.vlgmr.msrb.gmra.mxu0 %vm123_vm0, %v1848_v47  ;;  %397 = vperm.xlu0 %1546, %v1883_v58  }
  0x1b   :  { %1450 = vmatmul.msk.bf16.gmra.mxu3 %vm123_vm0, %v1759_v14  ;;  %933 = vmatpush.bf16.msra.mxu0 %v1495_v55 }
  0x1c   :  { %853 = vmatpush.bf16.msra.mxu1 %v1403_v20  ;;  %407 = vperm.xlu1 %1547, %v1893_v63   ;;  %v1942_v20 = vld [vmem:[%s2545_s5 + $0x38] sm:$0xff] }
  0x1d   :  { %338 = vmatpush.bf16.msrb.mxu2 %v1723_v5  ;;  %v1530_v5 = vld [vmem:[%s2540_s0 + $0x24] sm:$0xf]  ;;  %417 = vperm.xlu2 %1548, %v1953_v23  }
  0x20   :  { %854 = vmatpush.bf16.msra.mxu1 %v1395_v25 }
  0x21   :  { %339 = vmatpush.bf16.msrb.mxu2 %v1729_v7  ;;  %v1486_v7 = vld [vmem:[%s2540_s0 + $0x20] sm:$0xf] }
  0x22   :  { %422 = vperm.xlu0 %1546, %v1923_v10  }
  0x24   :  { %855 = vmatpush.bf16.msra.mxu1 %v1387_v32  ;;  %427 = vperm.xlu1 %1547, %v1942_v20  }
  0x28   :  { %856 = vmatpush.bf16.msra.mxu1 %v1379_v41 }
  0x29   :  { %1375 = vmatmul.msk.bf16.gmra.mxu1 %vm123_vm0, %v1515_v15 }
  0x2a   :  { %1453 = vmatmul.msk.bf16.gmra.mxu0 %vm123_vm0, %v1743_v11 }
  0x2b   :  { %1451 = vmatmul.msk.bf16.gmra.mxu3 %vm123_vm0, %v1770_v16 }
  0x3a   :  { %1454 = vmatmul.msk.bf16.gmra.mxu0 %vm123_vm0, %v1759_v14 }
  0x3b   :  { %1472 = vmatmul.msk.bf16.vlgmr.msrb.gmra.mxu3 %vm123_vm0, %v1512_v8  ;;  %v1491_v8 = vor.u32 %v1530_v5, %v1488_v6 }
  0x3d   :  { %963 = vmatpush.bf16.msra.mxu3 %v1491_v8 }
  0x4a   :  { %1455 = vmatmul.msk.bf16.gmra.mxu0 %vm123_vm0, %v1770_v16 }
  0x4b   :  { %1473 = vmatmul.msk.bf16.gmra.mxu3 %vm123_vm0, %v1513_v9  ;;  %v1531_v9 = vld [vmem:[%s2540_s0 + $0x24] sm:$0xf0] }
  0x4c   :  { %v1487_v12 = vor.u32 %v1531_v9, %v1486_v7 }
  0x4e   :  { %934 = vmatpush.bf16.msra.mxu0 %v1487_v12 }
  0x5a   :  { %1500 = vmatmul.msk.bf16.vlgmr.msra.gmra.mxu0 %vm123_vm0, %v1848_v47 }
  0x5b   :  { %1474 = vmatmul.msk.bf16.gmra.mxu3 %vm123_vm0, %v1514_v13 }
  0x6a   :  { %1501 = vmatmul.msk.bf16.gmra.mxu0 %vm123_vm0, %v1743_v11 }
  0x6b   :  { %1475 = vmatmul.msk.bf16.gmra.mxu3 %vm123_vm0, %v1515_v15 }
  0x6d   :  { %v2012_v6 = vpop.permute.xlu2 %412 }
  0x7a   :  { %1502 = vmatmul.msk.bf16.gmra.mxu0 %vm123_vm0, %v1759_v14 }
  0x7b   :  { %1504 = vmatmul.msk.bf16.vlgmr.msra.gmra.mxu3 %vm123_vm0, %v1848_v47 }
  0x84   :  { %v1988_v46 = vpop.permute.xlu1 %402 }
  0x86   :  { %v145_v57 = vpop.f32.mrf.mxu0  ;;  %v150_v59 = vpop.f32.mrf.mxu1 }
  0x8a   :  { %1503 = vmatmul.msk.bf16.gmra.mxu0 %vm123_vm0, %v1770_v16 }
  0x8b   :  { %1505 = vmatmul.msk.bf16.gmra.mxu3 %vm123_vm0, %v1743_v11 }
  0x8e   :  { %v147_v60 = vpop.f32.mrf.mxu0  ;;  %v1886_v62 = vpop.f32.mrf.mxu3 }
  0x8f   :  { %v165_v61 = vpack.c.bf16 %v147_v60, %v145_v57  ;;  %v152_v0 = vpop.f32.mrf.mxu1 }
  0x90   :  { %v166_v3 = vpack.c.bf16 %v152_v0, %v150_v59  ;;  %v2000_v59 = vpop.permute.xlu1 %407 }
  0x91   :  { %1408 = vmatmul.msk.bf16.vlgmr.msrb.gmra.mxu1 %vm209_vm1, %v165_v61  ;;  %1412 = vmatmul.msk.bf16.vlgmr.msra.gmra.mxu2 %vm209_vm1, %v165_v61 }
  0x92   :  { %882 = vmatpush.bf16.msra.mxu2 %v1795_v24 }
  0x96   :  { %v1899_v1 = vpop.f32.mrf.mxu3  ;;  %883 = vmatpush.bf16.msra.mxu2 %v1805_v28 }
  0x97   :  { %v155_v2 = vpop.f32.mrf.mxu1 }
  0x9a   :  { %884 = vmatpush.bf16.msra.mxu2 %v1391_v36  ;;  %v370_v36 = vpop.f32.mrf.mxu0 }
  0x9b   :  { %1506 = vmatmul.msk.bf16.gmra.mxu3 %vm123_vm0, %v1759_v14 }
  0x9e   :  { %v1902_v4 = vpop.f32.mrf.mxu3  ;;  %885 = vmatpush.bf16.msra.mxu2 %v1383_v45 }
  0x9f   :  { %v157_v15 = vpop.f32.mrf.mxu1 }
  0xa0   :  { %v167_v17 = vpack.c.bf16 %v157_v15, %v155_v2 }
  0xa1   :  { %1409 = vmatmul.msk.bf16.gmra.mxu1 %vm209_vm1, %v166_v3  ;;  %1413 = vmatmul.msk.bf16.gmra.mxu2 %vm209_vm1, %v166_v3  ;;  %v2008_v3 = vpop.permute.xlu0 %392 }
  0xa2   :  { %v372_v37 = vpop.f32.mrf.mxu0 }
  0xa6   :  { %v1926_v13 = vpop.f32.mrf.mxu3 }
  0xa7   :  { %v160_v21 = vpop.f32.mrf.mxu1 }
  0xaa   :  { %v375_v40 = vpop.f32.mrf.mxu0 }
  0xab   :  { %1507 = vmatmul.msk.bf16.gmra.mxu3 %vm123_vm0, %v1770_v16 }
  0xae   :  { %v1930_v18 = vpop.f32.mrf.mxu3 }
  0xaf   :  { %v162_v24 = vpop.f32.mrf.mxu1 }
  0xb0   :  { %v168_v25 = vpack.c.bf16 %v162_v24, %v160_v21  ;;  %v2023_v24 = vpop.permute.xlu0 %397 }
  0xb1   :  { %1410 = vmatmul.msk.bf16.gmra.mxu1 %vm209_vm1, %v167_v17  ;;  %1414 = vmatmul.msk.bf16.gmra.mxu2 %vm209_vm1, %v167_v17 }
  0xb2   :  { %v377_v45 = vpop.f32.mrf.mxu0 }
  0xb6   :  { %v1948_v22 = vpop.f32.mrf.mxu3 }
  0xba   :  { %v380_v55 = vpop.f32.mrf.mxu0 }
  0xbe   :  { %v813_v26 = vpop.f32.mrf.mxu3 }
  0xc1   :  { %1411 = vmatmul.msk.bf16.gmra.mxu1 %vm209_vm1, %v168_v25  ;;  %1415 = vmatmul.msk.bf16.gmra.mxu2 %vm209_vm1, %v168_v25 }
  0xc2   :  { %v382_v7 = vpop.f32.mrf.mxu0 }
  0xc6   :  { %v815_v27 = vpop.f32.mrf.mxu3 }
  0xc7   :  { %v833_v28 = vpack.c.bf16 %v815_v27, %v813_v26 }
  0xce   :  { %v818_v29 = vpop.f32.mrf.mxu3 }
  0xd1   :  { %1448 = vmatmul.msk.bf16.vlgmr.msrb.gmra.mxu2 %vm123_vm0, %v1848_v47  ;;  %1476 = vmatmul.msk.bf16.vlgmr.msra.gmra.mxu1 %vm209_vm1, %v833_v28 }
  0xd6   :  { %v820_v30 = vpop.f32.mrf.mxu3 }
  0xd7   :  { %v834_v31 = vpack.c.bf16 %v820_v30, %v818_v29 }
  0xde   :  { %v823_v11 = vpop.f32.mrf.mxu3 }
  0xe1   :  { %1477 = vmatmul.msk.bf16.gmra.mxu1 %vm209_vm1, %v834_v31  ;;  %1480 = vmatmul.msk.bf16.vlgmr.msra.gmra.mxu2 %vm209_vm1, %v833_v28  ;;  %v385_v28 = vpop.f32.mrf.mxu0 }
  0xe6   :  { %v825_v32 = vpop.f32.mrf.mxu3 }
  0xe7   :  { %v835_v33 = vpack.c.bf16 %v825_v32, %v823_v11 }
  0xee   :  { %v828_v34 = vpop.f32.mrf.mxu3 }
  0xf1   :  { %1478 = vmatmul.msk.bf16.gmra.mxu1 %vm209_vm1, %v835_v33  ;;  %1481 = vmatmul.msk.bf16.gmra.mxu2 %vm209_vm1, %v834_v31 }
  0xf6   :  { %v830_v14 = vpop.f32.mrf.mxu3 }
  0xf7   :  { %v836_v35 = vpack.c.bf16 %v830_v14, %v828_v34 }
 0x101   :  { %1479 = vmatmul.msk.bf16.gmra.mxu1 %vm209_vm1, %v836_v35  ;;  %1482 = vmatmul.msk.bf16.gmra.mxu2 %vm209_vm1, %v835_v33 }
 0x10e   :  { %v1979_v38 = vpop.f32.mrf.mxu1 }
 0x111   :  { %1483 = vmatmul.msk.bf16.gmra.mxu2 %vm209_vm1, %v836_v35  ;;  %v387_v35 = vpop.f32.mrf.mxu0 }
 0x114   :  { %v260_v16 = vpop.f32.mrf.mxu2 }
 0x115   :  { %v1982_v39 = vadd.f32 %v370_v36, %v260_v16 }
 0x116   :  { %v1984_v41 = vpop.f32.mrf.mxu1 }
 0x11c   :  { %v262_v42 = vpop.f32.mrf.mxu2 }
 0x11d   :  { %v1986_v43 = vadd.f32 %v372_v37, %v262_v42 }
 0x11e   :  { %v236_v44 = vpop.f32.mrf.mxu1 }
 0x11f   :  { %v347_v47 = vadd.f32 %v1886_v62, %v236_v44 }
 0x121   :  { %v1995_v53 = vadd.f32 %v1988_v46, %v347_v47 }
 0x124   :  { %v265_v48 = vpop.f32.mrf.mxu2 }
 0x125   :  { %v376_v49 = vadd.f32 %v375_v40, %v265_v48  ;;  %v936_v48 = vpop.f32.mrf.mxu0 }
 0x126   :  { %v238_v51 = vpop.f32.mrf.mxu1 }
 0x127   :  { %v1992_v52 = vadd.f32 %v1988_v46, %v376_v49  ;;  %v349_v57 = vadd.f32 %v1899_v1, %v238_v51 }
 0x129   :  { %v452_v54 = vadd.f32 %v1992_v52, %v1995_v53  ;;  %v2006_v2 = vadd.f32 %v2000_v59, %v349_v57 }
 0x12b   :  { %453 = vadd.xlane.f32.xlu1 %v452_v54 }
 0x12c   :  { %v267_v60 = vpop.f32.mrf.mxu2 }
 0x12d   :  { %v378_v61 = vadd.f32 %v377_v45, %v267_v60  ;;  %v2064_v60 = vadd.f32 %v2008_v3, %v1982_v39 }
 0x12e   :  { %v241_v62 = vpop.f32.mrf.mxu1 }
 0x12f   :  { %v2003_v0 = vadd.f32 %v2000_v59, %v378_v61  ;;  %v352_v1 = vadd.f32 %v1902_v4, %v241_v62  ;;  %v2026_v4 = vpop.permute.xlu2 %417  ;;  %v938_v62 = vpop.f32.mrf.mxu0 }
 0x131   :  { %v455_v5 = vadd.f32 %v2003_v0, %v2006_v2  ;;  %v2019_v17 = vadd.f32 %v2012_v6, %v352_v1 }
 0x133   :  { %456 = vadd.xlane.f32.xlu2 %v455_v5 }
 0x134   :  { %v270_v8 = vpop.f32.mrf.mxu2 }
 0x135   :  { %v381_v9 = vadd.f32 %v380_v55, %v270_v8  ;;  %v965_v55 = vpop.f32.mrf.mxu3 }
 0x136   :  { %v243_v12 = vpop.f32.mrf.mxu1 }
 0x137   :  { %v2016_v15 = vadd.f32 %v2012_v6, %v381_v9  ;;  %v354_v25 = vadd.f32 %v1926_v13, %v243_v12  ;;  %v2037_v13 = vpop.permute.xlu0 %422 }
 0x139   :  { %v458_v21 = vadd.f32 %v2016_v15, %v2019_v17  ;;  %v2032_v31 = vadd.f32 %v2026_v4, %v354_v25  ;;  %v941_v25 = vpop.f32.mrf.mxu0 }
 0x13b   :  { %459 = vadd.xlane.f32.xlu2 %v458_v21 }
 0x13c   :  { %v272_v26 = vpop.f32.mrf.mxu2 }
 0x13d   :  { %v383_v27 = vadd.f32 %v382_v7, %v272_v26  ;;  %v967_v9 = vpop.f32.mrf.mxu3 }
 0x13e   :  { %v246_v29 = vpop.f32.mrf.mxu1 }
 0x13f   :  { %v2029_v30 = vadd.f32 %v2026_v4, %v383_v27  ;;  %v357_v32 = vadd.f32 %v1930_v18, %v246_v29  ;;  %v2048_v18 = vpop.permute.xlu1 %427 }
 0x141   :  { %v461_v11 = vadd.f32 %v2029_v30, %v2032_v31  ;;  %v2043_v36 = vadd.f32 %v2037_v13, %v357_v32 }
 0x143   :  { %462 = vadd.xlane.f32.xlu0 %v461_v11 }
 0x144   :  { %v275_v33 = vpop.f32.mrf.mxu2 }
 0x145   :  { %v386_v34 = vadd.f32 %v385_v28, %v275_v33  ;;  %v970_v29 = vpop.f32.mrf.mxu3 }
 0x146   :  { %v248_v37 = vpop.f32.mrf.mxu1 }
 0x147   :  { %v2040_v14 = vadd.f32 %v2037_v13, %v386_v34  ;;  %v359_v40 = vadd.f32 %v1948_v22, %v248_v37 }
 0x149   :  { %v464_v16 = vadd.f32 %v2040_v14, %v2043_v36  ;;  %v2054_v47 = vadd.f32 %v2048_v18, %v359_v40 }
 0x14b   :  { %465 = vadd.xlane.f32.xlu1 %v464_v16 }
 0x14c   :  { %v277_v42 = vpop.f32.mrf.mxu2 }
 0x14d   :  { %v388_v44 = vadd.f32 %v387_v35, %v277_v42  ;;  %v943_v35 = vpop.f32.mrf.mxu0 }
 0x14e   :  { %v858_v51 = vpop.f32.mrf.mxu1 }
 0x14f   :  { %v2051_v45 = vadd.f32 %v2048_v18, %v388_v44  ;;  %v937_v12 = vadd.f32 %v936_v48, %v858_v51  ;;  %v972_v44 = vpop.f32.mrf.mxu3 }
 0x151   :  { %v467_v49 = vadd.f32 %v2051_v45, %v2054_v47  ;;  %v2079_v28 = vadd.f32 %v937_v12, %v2008_v3 }
 0x153   :  { %468 = vadd.xlane.f32.xlu2 %v467_v49  ;;  %2561 = vst [vmem:[#allocation5_spill] sm:$0xff] %v2079_v28 }
 0x154   :  { %v341_v54 = vpop.f32.mrf.mxu2 }
 0x155   :  { %v342_v22 = vadd.f32 %v341_v54, %v1979_v38  ;;  %v2074_v38 = vadd.f32 %v2023_v24, %v1986_v43  ;;  %v946_v54 = vpop.f32.mrf.mxu0 }
 0x156   :  { %v860_v5 = vpop.f32.mrf.mxu1 }
 0x157   :  { %v2060_v57 = vadd.f32 %v2008_v3, %v342_v22  ;;  %v939_v11 = vadd.f32 %v938_v62, %v860_v5  ;;  %v975_v5 = vpop.f32.mrf.mxu3 }
 0x159   :  { %v446_v61 = vadd.f32 %v2064_v60, %v2060_v57  ;;  %v2087_v34 = vadd.f32 %v939_v11, %v2023_v24 }
 0x15b   :  { %447 = vadd.xlane.f32.xlu2 %v446_v61 }
 0x15c   :  { %v343_v1 = vpop.f32.mrf.mxu2 }
 0x15d   :  { %v344_v7 = vadd.f32 %v343_v1, %v1984_v41 }
 0x15e   :  { %v863_v27 = vpop.f32.mrf.mxu1 }
 0x15f   :  { %v2070_v8 = vadd.f32 %v2023_v24, %v344_v7  ;;  %v942_v40 = vadd.f32 %v941_v25, %v863_v27 }
 0x161   :  { %v449_v39 = vadd.f32 %v2074_v38, %v2070_v8  ;;  %v2095_v49 = vadd.f32 %v942_v40, %v1988_v46 }
 0x163   :  { %450 = vadd.xlane.f32.xlu0 %v449_v39  ;;  %v948_v39 = vpop.f32.mrf.mxu0 }
 0x164   :  { %v887_v21 = vpop.f32.mrf.mxu2 }
 0x165   :  { %v966_v26 = vadd.f32 %v965_v55, %v887_v21 }
 0x166   :  { %v865_v16 = vpop.f32.mrf.mxu1 }
 0x167   :  { %v2082_v41 = vadd.f32 %v966_v26, %v2008_v3  ;;  %v944_v55 = vadd.f32 %v943_v35, %v865_v16 }
 0x169   :  { %2562 = vst [vmem:[#allocation6_spill] sm:$0xff] %v2082_v41  ;;  %v1001_v43 = vadd.f32 %v2082_v41, %v2079_v28  ;;  %v2103_v1 = vadd.f32 %v944_v55, %v2000_v59 }
 0x16b   :  { %1002 = vadd.xlane.f32.xlu0 %v1001_v43  ;;  %2564 = vst [vmem:[#allocation8_spill] sm:$0xff] %v2103_v1  ;;  %v977_v43 = vpop.f32.mrf.mxu3  ;;  %v951_v35 = vpop.f32.mrf.mxu0 }
 0x16c   :  { %v889_v32 = vpop.f32.mrf.mxu2 }
 0x16d   :  { %v968_v33 = vadd.f32 %v967_v9, %v889_v32 }
 0x16e   :  { %v868_v22 = vpop.f32.mrf.mxu1 }
 0x16f   :  { %v2090_v37 = vadd.f32 %v968_v33, %v2023_v24  ;;  %v947_v9 = vadd.f32 %v946_v54, %v868_v22 }
 0x171   :  { %2563 = vst [vmem:[#allocation7_spill] sm:$0xff] %v2090_v37  ;;  %v1004_v3 = vadd.f32 %v2090_v37, %v2087_v34  ;;  %v2111_v26 = vadd.f32 %v947_v9, %v2012_v6 }
 0x173   :  { %1005 = vadd.xlane.f32.xlu1 %v1004_v3  ;;  %2566 = vst [vmem:[#allocation10_spill] sm:$0xff] %v2111_v26  ;;  %v980_v40 = vpop.f32.mrf.mxu3  ;;  %v953_v55 = vpop.f32.mrf.mxu0 }
 0x174   :  { %v892_v42 = vpop.f32.mrf.mxu2 }
 0x175   :  { %v971_v48 = vadd.f32 %v970_v29, %v892_v42 }
 0x176   :  { %v870_v12 = vpop.f32.mrf.mxu1 }
 0x177   :  { %v2098_v51 = vadd.f32 %v971_v48, %v1988_v46  ;;  %v949_v29 = vadd.f32 %v948_v39, %v870_v12 }
 0x179   :  { %v1007_v24 = vadd.f32 %v2098_v51, %v2095_v49  ;;  %v2119_v16 = vadd.f32 %v949_v29, %v2026_v4 }
 0x17b   :  { %1008 = vadd.xlane.f32.xlu2 %v1007_v24 }
 0x17c   :  { %v894_v61 = vpop.f32.mrf.mxu2 }
 0x17d   :  { %v973_v62 = vadd.f32 %v972_v44, %v894_v61 }
 0x17e   :  { %v873_v33 = vpop.f32.mrf.mxu1 }
 0x17f   :  { %v2106_v7 = vadd.f32 %v973_v62, %v2000_v59  ;;  %v952_v42 = vadd.f32 %v951_v35, %v873_v33  ;;  %v982_v62 = vpop.f32.mrf.mxu3 }
 0x181   :  { %2565 = vst [vmem:[#allocation9_spill] sm:$0xff] %v2106_v7  ;;  %v1010_v46 = vadd.f32 %v2106_v7, %v2103_v1  ;;  %v2127_v54 = vadd.f32 %v952_v42, %v2037_v13 }
 0x183   :  { %1011 = vadd.xlane.f32.xlu0 %v1010_v46  ;;  %2568 = vst [vmem:[#allocation12_spill] sm:$0xff] %v2127_v54 }
 0x184   :  { %v897_v21 = vpop.f32.mrf.mxu2 }
 0x185   :  { %v976_v25 = vadd.f32 %v975_v5, %v897_v21  ;;  %v1653_v21 = vmov 256.0  }
 0x186   :  { %v875_v22 = vpop.f32.mrf.mxu1  ;;  %1552 = vrcp.f32 %v1653_v21 }
 0x187   :  { %v2114_v27 = vadd.f32 %v976_v25, %v2012_v6  ;;  %v954_v61 = vadd.f32 %v953_v55, %v875_v22  ;;  %v2154_v22 = vld [vmem:[%s2546_s6 + $0x10] sm:$0xff]  ;;  %v2159_v55 = vld [vmem:[%s2546_s6 + $0x8] sm:$0xff] }
 0x189   :  { %2567 = vst [vmem:[#allocation11_spill] sm:$0xff] %v2114_v27  ;;  %v1013_v59 = vadd.f32 %v2114_v27, %v2111_v26  ;;  %v2135_v9 = vadd.f32 %v954_v61, %v2048_v18  ;;  %v2262_v27 = vld [vmem:[%s2548_s8 + $0x38] sm:$0xff] }
 0x18b   :  { %1014 = vadd.xlane.f32.xlu1 %v1013_v59  ;;  %2570 = vst [vmem:[#allocation14_spill] sm:$0xff] %v2135_v9 }
 0x18c   :  { %v899_v11 = vpop.f32.mrf.mxu2 }
 0x18d   :  { %v978_v32 = vadd.f32 %v977_v43, %v899_v11  ;;  %v1553_v43 = vpop.eup %1552 }
 0x18e   :  { %v471_v59 = vmul.f32 256.0, %v1553_v43  ;;  %vm475_vm2 = vweird.f32 %v1553_v43 }
 0x18f   :  { %v2122_v3 = vadd.f32 %v978_v32, %v2026_v4 }
 0x190   :  { %v472_v29 = vsub.f32 1.0, %v471_v59 }
 0x191   :  { %v1016_v6 = vadd.f32 %v2122_v3, %v2119_v16 }
 0x192   :  { %v473_v32 = vmul.f32 %v1553_v43, %v472_v29 }
 0x193   :  { %1017 = vadd.xlane.f32.xlu2 %v1016_v6 }
 0x194   :  { %v902_v44 = vpop.f32.mrf.mxu2  ;;  %v474_v33 = vadd.f32 %v1553_v43, %v473_v32 }
 0x195   :  { %v981_v48 = vadd.f32 %v980_v40, %v902_v44  ;;  %v2148_v44 = vld [vmem:[%s2546_s6] sm:$0xff] }
 0x196   :  { %v2142_v40 = vsel %vm475_vm2, %v1553_v43, %v474_v33 }
 0x197   :  { %v2130_v24 = vadd.f32 %v981_v48, %v2037_v13 }
 0x199   :  { %2569 = vst [vmem:[#allocation13_spill] sm:$0xff] %v2130_v24  ;;  %v1019_v4 = vadd.f32 %v2130_v24, %v2127_v54 }
 0x19b   :  { %1020 = vadd.xlane.f32.xlu0 %v1019_v4 }
 0x19c   :  { %v904_v5 = vpop.f32.mrf.mxu2 }
 0x19d   :  { %v983_v46 = vadd.f32 %v982_v62, %v904_v5 }
 0x19f   :  { %v2138_v39 = vadd.f32 %v983_v46, %v2048_v18  ;;  %v454_v18 = vpop.xlane.xlu1 %453  ;;  %v2167_v46 = vld [vmem:[%s2546_s6 + $0x18] sm:$0xff] }
 0x1a0   :  { %v479_v48 = vmul.f32 %v2142_v40, %v454_v18 }
 0x1a1   :  { %2571 = vst [vmem:[#allocation15_spill] sm:$0xff] %v2138_v39  ;;  %v1022_v13 = vadd.f32 %v2138_v39, %v2135_v9 }
 0x1a3   :  { %1023 = vadd.xlane.f32.xlu1 %v1022_v13  ;;  %v487_v13 = vmul.f32 %v479_v48, %v2154_v22 }
 0x1a6   :  { %v457_v12 = vpop.xlane.xlu2 %456 }
 0x1a7   :  { %v480_v61 = vmul.f32 %v2142_v40, %v457_v12  ;;  %v2175_v12 = vld [vmem:[%s2546_s6 + $0x20] sm:$0xff] }
 0x1a9   :  { %v488_v29 = vmul.f32 %v480_v61, %v2167_v46 }
 0x1ae   :  { %v460_v25 = vpop.xlane.xlu2 %459 }
 0x1af   :  { %v481_v21 = vmul.f32 %v2142_v40, %v460_v25  ;;  %v2184_v25 = vld [vmem:[%s2546_s6 + $0x28] sm:$0xff] }
 0x1b1   :  { %v489_v48 = vmul.f32 %v481_v21, %v2175_v12 }
 0x1b6   :  { %v463_v35 = vpop.xlane.xlu0 %462 }
 0x1b7   :  { %v482_v32 = vmul.f32 %v2142_v40, %v463_v35  ;;  %v2192_v35 = vld [vmem:[%s2546_s6 + $0x30] sm:$0xff] }
 0x1be   :  { %v466_v59 = vpop.xlane.xlu1 %465 }
 0x1c6   :  { %v469_v11 = vpop.xlane.xlu2 %468 }
 0x1ce   :  { %v448_v6 = vpop.xlane.xlu2 %447 }
 0x1cf   :  { %v477_v42 = vmul.f32 %v2142_v40, %v448_v6 }
 0x1d1   :  { %v485_v62 = vmul.f32 %v477_v42, %v2148_v44  ;;  %v497_v42 = vsel %vm493_vm3, %v487_v13, 0.0  ;;  %v2200_v13 = vld [vmem:[%s2546_s6 + $0x38] sm:$0xff] }
 0x1d3   :  { %v494_v33 = vsel %vm493_vm3, %v485_v62, 0.0  ;;  %v499_v62 = vsel %vm493_vm3, %v488_v29, 0.0 }
 0x1d6   :  { %v451_v4 = vpop.xlane.xlu0 %450 }
 0x1d7   :  { %v478_v5 = vmul.f32 %v2142_v40, %v451_v4  ;;  %v483_v4 = vmul.f32 %v2142_v40, %v466_v59  ;;  %v501_v59 = vsel %vm493_vm3, %v489_v48, 0.0  ;;  %v2211_v48 = vld [vmem:[%s2547_s7] sm:$0x1]  ;;  %s1336_s7 = sshll.u32 %s2549_s9, 4  ;;  %s1337_s7 = int_to_ptr.hbm [resolvable:$true] %s1336_s7 }
 0x1d9   :  { %v486_v43 = vmul.f32 %v478_v5, %v2159_v55  ;;  %v490_v5 = vmul.f32 %v482_v32, %v2184_v25 }
 0x1db   :  { %v495_v6 = vsel %vm493_vm3, %v486_v43, 0.0  ;;  %v484_v43 = vmul.f32 %v2142_v40, %v469_v11  ;;  %v503_v39 = vsel %vm493_vm3, %v490_v5, 0.0 }
 0x1dc   :  { %v496_v18 = vadd.f32 %v495_v6, %v494_v33  ;;  %v491_v33 = vmul.f32 %v483_v4, %v2192_v35 }
 0x1de   :  { %v498_v61 = vadd.f32 %v497_v42, %v496_v18  ;;  %v492_v18 = vmul.f32 %v484_v43, %v2200_v13  ;;  %v505_v32 = vsel %vm493_vm3, %v491_v33, 0.0  ;;  %v2217_v43 = vld [vmem:[%s2548_s8 + $0x10] sm:$0xff]  ;;  %v1003_v33 = vpop.xlane.xlu0 %1002 }
 0x1e0   :  { %v500_v21 = vadd.f32 %v499_v62, %v498_v61  ;;  %v507_v11 = vsel %vm493_vm3, %v492_v18, 0.0 }
 0x1e2   :  { %v502_v6 = vadd.f32 %v501_v59, %v500_v21 }
 0x1e4   :  { %v504_v29 = vadd.f32 %v503_v39, %v502_v6 }
 0x1e6   :  { %v506_v42 = vadd.f32 %v505_v32, %v504_v29  ;;  %v2238_v32 = vld [vmem:[%s2548_s8 + $0x28] sm:$0xff] }
 0x1e8   :  { %v508_v9 = vadd.f32 %v507_v11, %v506_v42  ;;  %v2243_v42 = vld [vmem:[%s2548_s8 + $0x20] sm:$0xff]  ;;  %v1006_v11 = vpop.xlane.xlu1 %1005 }
 0x1ea   :  { %v509_v24 = vrot.slane %v508_v9, 4 }
 0x1ec   :  { %v510_v54 = vadd.f32 %v509_v24, %v508_v9  ;;  %v2222_v24 = vld [vmem:[%s2548_s8 + $0x8] sm:$0xff] }
 0x1ee   :  { %v511_v7 = vrot.slane %v510_v54, 2 }
 0x1f0   :  { %v512_v61 = vadd.f32 %v511_v7, %v510_v54  ;;  %v2227_v7 = vld [vmem:[%s2548_s8] sm:$0xff] }
 0x1f2   :  { %v513_v62 = vrot.slane %v512_v61, 1 }
 0x1f4   :  { %v514_v4 = vadd.f32 %v513_v62, %v512_v61  ;;  %v2248_v61 = vld [vmem:[%s2548_s8 + $0x18] sm:$0xff]  ;;  %v1009_v62 = vpop.xlane.xlu2 %1008 }
 0x1f6   :  { %v515_v5 = vadd.f32 %v514_v4, %v2211_v48 }
 0x1f8   :  { %v516_v39 = vmax.f32 %v515_v5, 0.0 }
 0x1fa   :  { %v517_v54 = vperm.slane %v516_v39, 0 }
 0x1fc   :  { %v520_v9 = vmul.f32 %v517_v54, %v2217_v43  ;;  %v519_v21 = vmul.f32 %v517_v54, %v2222_v24  ;;  %v518_v59 = vmul.f32 %v517_v54, %v2227_v7  ;;  %v523_v4 = vmul.f32 %v517_v54, %v2238_v32 }
 0x1fd   :  { %v522_v5 = vmul.f32 %v517_v54, %v2243_v42  ;;  %v521_v39 = vmul.f32 %v517_v54, %v2248_v61 }
 0x1fe   :  { %v532_v6 = vsel %vm493_vm3, %v520_v9, 0.0  ;;  %v529_v18 = vsel %vm493_vm3, %v519_v21, 0.0  ;;  %v526_v29 = vsel %vm493_vm3, %v518_v59, 0.0  ;;  %v1026_v9 = vmul.f32 %v1006_v11, %v2142_v40  ;;  %v1012_v59 = vpop.xlane.xlu0 %1011  ;;  %v1015_v26 = vpop.xlane.xlu1 %1014 }
 0x1ff   :  { %533 = vadd.xlane.f32.xlu1 %v532_v6  ;;  %530 = vadd.xlane.f32.xlu0 %v529_v18  ;;  %v1025_v21 = vmul.f32 %v1003_v33, %v2142_v40  ;;  %v541_v6 = vsel %vm493_vm3, %v523_v4, 0.0  ;;  %v538_v18 = vsel %vm493_vm3, %v522_v5, 0.0  ;;  %v535_v1 = vsel %vm493_vm3, %v521_v39, 0.0  ;;  %v81_v33 = vld [vmem:[%s2548_s8 + $0x30] sm:$0xff] }
 0x200   :  { %527 = vadd.xlane.f32.xlu2 %v526_v29  ;;  %v1027_v29 = vmul.f32 %v1009_v62, %v2142_v40  ;;  %v1034_v11 = vmul.f32 %v1026_v9, %v2159_v55  ;;  %v1028_v4 = vmul.f32 %v1012_v59, %v2142_v40  ;;  %v525_v39 = vmul.f32 %v517_v54, %v2262_v27 }
 0x201   :  { %v1033_v62 = vmul.f32 %v1025_v21, %v2148_v44  ;;  %v524_v41 = vmul.f32 %v517_v54, %v81_v33 }
 0x202   :  { %v1036_v28 = vmul.f32 %v1028_v4, %v2167_v46  ;;  %v547_v59 = vsel %vm493_vm3, %v525_v39, 0.0 }
 0x203   :  { %v1041_v55 = vsel %vm493_vm3, %v1033_v62, 0.0 }
 0x204   :  { %v1046_v46 = vsel %vm493_vm3, %v1036_v28, 0.0 }
 0x206   :  { %v1018_v5 = vpop.xlane.xlu2 %1017 }
 0x207   :  { %542 = vadd.xlane.f32.xlu1 %v541_v6  ;;  %539 = vadd.xlane.f32.xlu0 %v538_v18  ;;  %v1035_v6 = vmul.f32 %v1027_v29, %v2154_v22  ;;  %v1029_v18 = vmul.f32 %v1015_v26, %v2142_v40  ;;  %v1030_v37 = vmul.f32 %v1018_v5, %v2142_v40  ;;  %v544_v26 = vsel %vm493_vm3, %v524_v41, 0.0 }
 0x208   :  { %536 = vadd.xlane.f32.xlu2 %v535_v1  ;;  %v1042_v1 = vsel %vm493_vm3, %v1034_v11, 0.0 }
 0x209   :  { %v1044_v44 = vsel %vm493_vm3, %v1035_v6, 0.0  ;;  %v1037_v21 = vmul.f32 %v1029_v18, %v2175_v12  ;;  %v1043_v54 = vadd.f32 %v1042_v1, %v1041_v55  ;;  %v1038_v29 = vmul.f32 %v1030_v37, %v2184_v25 }
 0x20b   :  { %v1045_v11 = vadd.f32 %v1044_v44, %v1043_v54  ;;  %v1048_v4 = vsel %vm493_vm3, %v1037_v21, 0.0  ;;  %v1050_v39 = vsel %vm493_vm3, %v1038_v29, 0.0 }
 0x20d   :  { %v1047_v5 = vadd.f32 %v1046_v46, %v1045_v11 }
 0x20e   :  { %v1021_v9 = vpop.xlane.xlu0 %1020 }
 0x20f   :  { %v1031_v22 = vmul.f32 %v1021_v9, %v2142_v40  ;;  %548 = vadd.xlane.f32.xlu0 %v547_v59  ;;  %v1049_v12 = vadd.f32 %v1048_v4, %v1047_v5 }
 0x210   :  { %545 = vadd.xlane.f32.xlu2 %v544_v26 }
 0x211   :  { %v1039_v62 = vmul.f32 %v1031_v22, %v2192_v35  ;;  %v1051_v1 = vadd.f32 %v1050_v39, %v1049_v12 }
 0x213   :  { %v1052_v18 = vsel %vm493_vm3, %v1039_v62, 0.0 }
 0x214   :  { %v1053_v28 = vadd.f32 %v1052_v18, %v1051_v1 }
 0x216   :  { %v1024_v6 = vpop.xlane.xlu1 %1023 }
 0x217   :  { %v1032_v41 = vmul.f32 %v1024_v6, %v2142_v40 }
 0x219   :  { %v1040_v55 = vmul.f32 %v1032_v41, %v2200_v13 }
 0x21b   :  { %v1054_v37 = vsel %vm493_vm3, %v1040_v55, 0.0 }
 0x21c   :  { %v1055_v25 = vadd.f32 %v1054_v37, %v1053_v28 }
 0x21e   :  { %v1056_v9 = vrot.slane %v1055_v25, 4 }
 0x220   :  { %v1057_v59 = vadd.f32 %v1056_v9, %v1055_v25  ;;  %v1654_v25 = vmov 1  }
 0x221   :  { %1550 = vset.pattern.permute.xlu2 %v1654_v25  ;;  %1549 = vset.pattern.permute.xlu1 %v1654_v25 }
 0x222   :  { %v1058_v44 = vrot.slane %v1057_v59, 2  ;;  %1551 = vset.pattern.permute.xlu0 %v1654_v25 }
 0x224   :  { %v1059_v35 = vadd.f32 %v1058_v44, %v1057_v59 }
 0x226   :  { %v1060_v21 = vrot.slane %v1059_v35, 1 }
 0x228   :  { %v1061_v22 = vadd.f32 %v1060_v21, %v1059_v35 }
 0x22a   :  { %v1062_v26 = vadd.f32 %v1061_v22, %v2211_v48 }
 0x22c   :  { %v1063_v54 = vmax.f32 %v1062_v26, 0.0 }
 0x22e   :  { %v1064_v46 = vperm.slane %v1063_v54, 0 }
 0x230   :  { %v1067_v29 = vmul.f32 %v1064_v46, %v2217_v43  ;;  %v1066_v40 = vmul.f32 %v1064_v46, %v2222_v24  ;;  %v1065_v13 = vmul.f32 %v1064_v46, %v2227_v7  ;;  %v1069_v5 = vmul.f32 %v1064_v46, %v2243_v42 }
 0x231   :  { %v1068_v48 = vmul.f32 %v1064_v46, %v2248_v61  ;;  %v1071_v24 = vmul.f32 %v1064_v46, %v81_v33  ;;  %v1070_v7 = vmul.f32 %v1064_v46, %v2238_v32  ;;  %v1072_v18 = vmul.f32 %v1064_v46, %v2262_v27 }
 0x232   :  { %v1079_v11 = vsel %vm493_vm3, %v1067_v29, 0.0  ;;  %v1076_v4 = vsel %vm493_vm3, %v1066_v40, 0.0  ;;  %v1073_v62 = vsel %vm493_vm3, %v1065_v13, 0.0  ;;  %v1085_v39 = vsel %vm493_vm3, %v1069_v5, 0.0 }
 0x233   :  { %1080 = vadd.xlane.f32.xlu0 %v1079_v11  ;;  %1077 = vadd.xlane.f32.xlu1 %v1076_v4  ;;  %v1082_v43 = vsel %vm493_vm3, %v1068_v48, 0.0  ;;  %v1091_v12 = vsel %vm493_vm3, %v1071_v24, 0.0  ;;  %v1088_v6 = vsel %vm493_vm3, %v1070_v7, 0.0  ;;  %v1094_v42 = vsel %vm493_vm3, %v1072_v18, 0.0 }
 0x234   :  { %1074 = vadd.xlane.f32.xlu2 %v1073_v62 }
 0x23b   :  { %1086 = vadd.xlane.f32.xlu1 %v1085_v39 }
 0x23c   :  { %1083 = vadd.xlane.f32.xlu2 %v1082_v43 }
 0x243   :  { %1092 = vadd.xlane.f32.xlu1 %v1091_v12 }
 0x244   :  { %1089 = vadd.xlane.f32.xlu2 %v1088_v6 }
 0x24c   :  { %1095 = vadd.xlane.f32.xlu2 %v1094_v42 }
 0x272   :  { %v534_v61 = vpop.xlane.xlu1 %533  ;;  %v531_v41 = vpop.xlane.xlu0 %530 }
 0x273   :  { %v552_v1 = vadd.f32 %v534_v61, %v1877_v56  ;;  %v551_v55 = vadd.f32 %v531_v41, %v1883_v58  ;;  %v528_v33 = vpop.xlane.xlu2 %527 }
 0x274   :  { %v550_v32 = vadd.f32 %v528_v33, %v1863_v50 }
 0x275   :  { %v560_v28 = vsub.f32 0.0, %v552_v1  ;;  %v559_v37 = vsub.f32 0.0, %v551_v55 }
 0x276   :  { %v558_v9 = vsub.f32 0.0, %v550_v32 }
 0x277   :  { %v570_v27 = vmul.f32 1.442695, %v560_v28  ;;  %v568_v59 = vmul.f32 1.442695, %v559_v37 }
 0x278   :  { %v566_v44 = vmul.f32 1.442695, %v558_v9 }
 0x279   :  { %1554 = vpow2.f32 %v570_v27 }
 0x27a   :  { %1556 = vpow2.f32 %v568_v59  ;;  %v543_v35 = vpop.xlane.xlu1 %542  ;;  %v540_v21 = vpop.xlane.xlu0 %539 }
 0x27b   :  { %1558 = vpow2.f32 %v566_v44  ;;  %v555_v56 = vadd.f32 %v543_v35, %v1953_v23  ;;  %v554_v58 = vadd.f32 %v540_v21, %v1937_v19  ;;  %v537_v50 = vpop.xlane.xlu2 %536 }
 0x27c   :  { %v553_v22 = vadd.f32 %v537_v50, %v1893_v63 }
 0x27d   :  { %v563_v26 = vsub.f32 0.0, %v555_v56  ;;  %v562_v54 = vsub.f32 0.0, %v554_v58 }
 0x27e   :  { %v561_v46 = vsub.f32 0.0, %v553_v22 }
 0x27f   :  { %v1555_v29 = vpop.eup %1554  ;;  %v576_v40 = vmul.f32 1.442695, %v563_v26  ;;  %v574_v5 = vmul.f32 1.442695, %v562_v54 }
 0x280   :  { %v1557_v13 = vpop.eup %1556  ;;  %v584_v11 = vadd.f32 1.0, %v1555_v29  ;;  %v572_v23 = vmul.f32 1.442695, %v561_v46 }
 0x281   :  { %v1559_v4 = vpop.eup %1558  ;;  %v2313_v62 = vadd.f32 1.0, %v1557_v13  ;;  %1560 = vpow2.f32 %v576_v40 }
 0x282   :  { %1562 = vrcp.f32 %v584_v11  ;;  %v2315_v48 = vadd.f32 1.0, %v1559_v4  ;;  %v549_v19 = vpop.xlane.xlu0 %548  ;;  %v629_v12 = vand.u32 2147483647, %v584_v11  ;;  %v631_v6 = vand.u32 2147483648, %v584_v11 }
 0x283   :  { %1564 = vrcp.f32 %v2313_v62  ;;  %v557_v63 = vadd.f32 %v549_v19, %v1942_v20  ;;  %v546_v39 = vpop.xlane.xlu2 %545  ;;  %vm625_vm4 = vweird.f32 %v584_v11  ;;  %vm610_vm5 = vweird.f32 %v2313_v62 }
 0x284   :  { %1566 = vrcp.f32 %v2315_v48  ;;  %v556_v43 = vadd.f32 %v546_v39, %v1923_v10  ;;  %vm2324_vm6 = vcmp.eq.f32.partialorder %v629_v12, 8.507059e+37  ;;  %v632_v32 = vor.u32 1.1754944e-38, %v631_v6 }
 0x285   :  { %1568 = vpow2.f32 %v574_v5  ;;  %v565_v24 = vsub.f32 0.0, %v557_v63  ;;  %v614_v37 = vand.u32 2147483647, %v2313_v62  ;;  %v616_v27 = vand.u32 2147483648, %v2313_v62 }
 0x286   :  { %1570 = vpow2.f32 %v572_v23  ;;  %v564_v7 = vsub.f32 0.0, %v556_v43  ;;  %v601_v56 = vand.u32 2147483648, %v2315_v48  ;;  %v599_v54 = vand.u32 2147483647, %v2315_v48 }
 0x287   :  { %v1561_v18 = vpop.eup %1560  ;;  %v580_v42 = vmul.f32 1.442695, %v565_v24  ;;  %vm615_vm11 = vcmp.eq.f32.partialorder %v614_v37, 8.507059e+37  ;;  %vm595_vm12 = vweird.f32 %v2315_v48  ;;  %v617_v19 = vor.u32 1.1754944e-38, %v616_v27 }
 0x288   :  { %v1563_v61 = vpop.eup %1562  ;;  %v578_v41 = vmul.f32 1.442695, %v564_v7  ;;  %v2321_v55 = vadd.f32 1.0, %v1561_v18  ;;  %v602_v39 = vor.u32 1.1754944e-38, %v601_v56  ;;  %vm600_vm15 = vcmp.eq.f32.partialorder %v599_v54, 8.507059e+37 }
 0x289   :  { %v1565_v1 = vpop.eup %1564  ;;  %1572 = vpow2.f32 %v580_v42  ;;  %v621_v20 = vmul.f32 %v1563_v61, %v584_v11  ;;  %vm626_vm7 = vweird.f32 %v1563_v61 }
 0x28a   :  { %v1567_v33 = vpop.eup %1566  ;;  %v606_v28 = vmul.f32 %v1565_v1, %v2313_v62  ;;  %1574 = vpow2.f32 %v578_v41  ;;  %vm611_vm8 = vweird.f32 %v1565_v1  ;;  %vm627_vm10 = vmor %vm625_vm4, %vm626_vm7 }
 0x28b   :  { %v1569_v25 = vpop.eup %1568  ;;  %v622_v9 = vsub.f32 1.0, %v621_v20  ;;  %v591_v59 = vmul.f32 %v1567_v33, %v2315_v48  ;;  %1576 = vrcp.f32 %v2321_v55  ;;  %vm596_vm9 = vweird.f32 %v1567_v33  ;;  %vm612_vm13 = vmor %vm610_vm5, %vm611_vm8 }
 0x28c   :  { %v1571_v44 = vpop.eup %1570  ;;  %v2332_v35 = vadd.f32 1.0, %v1569_v25  ;;  %v607_v21 = vsub.f32 1.0, %v606_v28  ;;  %vm597_vm14 = vmor %vm595_vm12, %vm596_vm9 }
 0x28d   :  { %v2336_v58 = vadd.f32 1.0, %v1571_v44  ;;  %v623_v50 = vmul.f32 %v1563_v61, %v622_v9  ;;  %v592_v22 = vsub.f32 1.0, %v591_v59 }
 0x28e   :  { %1578 = vrcp.f32 %v2332_v35  ;;  %v608_v26 = vmul.f32 %v1565_v1, %v607_v21  ;;  %v659_v62 = vand.u32 2147483647, %v2332_v35  ;;  %v661_v41 = vand.u32 2147483648, %v2332_v35 }
 0x28f   :  { %v1573_v46 = vpop.eup %1572  ;;  %1580 = vrcp.f32 %v2336_v58  ;;  %v624_v29 = vadd.f32 %v1563_v61, %v623_v50  ;;  %v593_v40 = vmul.f32 %v1567_v33, %v592_v22  ;;  %v644_v20 = vand.u32 2147483647, %v2336_v58 }
 0x290   :  { %v2341_v13 = vadd.f32 1.0, %v1573_v46  ;;  %v609_v4 = vadd.f32 %v1565_v1, %v608_v26  ;;  %v1575_v5 = vpop.eup %1574  ;;  %vm655_vm0 = vweird.f32 %v2332_v35  ;;  %vm2365_vm1 = vcmp.eq.f32.partialorder %v659_v62, 8.507059e+37 }
 0x291   :  { %v628_v23 = vsel %vm627_vm10, %v1563_v61, %v624_v29  ;;  %v594_v63 = vadd.f32 %v1567_v33, %v593_v40  ;;  %v2349_v43 = vadd.f32 1.0, %v1575_v5  ;;  %v2354_v7 = vpop.eup %1576  ;;  %vm640_vm2 = vweird.f32 %v2336_v58 }
 0x292   :  { %1582 = vrcp.f32 %v2341_v13  ;;  %v633_v11 = vsel %vm2324_vm6, %v632_v32, %v628_v23  ;;  %v613_v24 = vsel %vm612_vm13, %v1565_v1, %v609_v4  ;;  %v646_v25 = vand.u32 2147483648, %v2336_v58 }
 0x293   :  { %722 = vperm.xlu0 %1551, %v633_v11   ;;  %v618_v48 = vsel %vm615_vm11, %v617_v19, %v613_v24  ;;  %v598_v12 = vsel %vm597_vm14, %v1567_v33, %v594_v63  ;;  %1584 = vrcp.f32 %v2349_v43  ;;  %v666_v33 = vmul.f32 %v2354_v7, %v2321_v55 }
 0x294   :  { %v1579_v6 = vpop.eup %1578  ;;  %717 = vperm.xlu2 %1550, %v618_v48   ;;  %v603_v18 = vsel %vm600_vm15, %v602_v39, %v598_v12  ;;  %v662_v59 = vor.u32 1.1754944e-38, %v661_v41  ;;  %vm2372_vm5 = vcmp.eq.f32.partialorder %v644_v20, 8.507059e+37  ;;  %vm700_vm6 = vweird.f32 %v2341_v13 }
 0x295   :  { %v1581_v42 = vpop.eup %1580  ;;  %712 = vperm.xlu1 %1549, %v603_v18   ;;  %v651_v61 = vmul.f32 %v1579_v6, %v2332_v35  ;;  %v667_v9 = vsub.f32 1.0, %v666_v33  ;;  %vm656_vm3 = vweird.f32 %v1579_v6  ;;  %v704_v54 = vand.u32 2147483647, %v2341_v13 }
 0x296   :  { %v636_v1 = vmul.f32 %v1581_v42, %v2336_v58  ;;  %vm641_vm4 = vweird.f32 %v1581_v42  ;;  %vm657_vm7 = vmor %vm655_vm0, %vm656_vm3  ;;  %v647_v40 = vor.u32 1.1754944e-38, %v646_v25  ;;  %v706_v4 = vand.u32 2147483648, %v2341_v13 }
 0x297   :  { %v652_v10 = vsub.f32 1.0, %v651_v61  ;;  %v668_v5 = vmul.f32 %v2354_v7, %v667_v9  ;;  %vm642_vm8 = vmor %vm640_vm2, %vm641_vm4  ;;  %v689_v35 = vand.u32 2147483647, %v2349_v43  ;;  %v691_v24 = vand.u32 2147483648, %v2349_v43 }
 0x298   :  { %v1583_v28 = vpop.eup %1582  ;;  %v637_v37 = vsub.f32 1.0, %v636_v1  ;;  %vm671_vm12 = vweird.f32 %v2354_v7  ;;  %vm685_vm13 = vweird.f32 %v2349_v43  ;;  %v707_v41 = vor.u32 1.1754944e-38, %v706_v4 }
 0x299   :  { %v653_v27 = vmul.f32 %v1579_v6, %v652_v10  ;;  %v696_v44 = vmul.f32 %v1583_v28, %v2341_v13  ;;  %v1585_v21 = vpop.eup %1584  ;;  %vm701_vm9 = vweird.f32 %v1583_v28  ;;  %vm670_vm14 = vweird.f32 %v2321_v55 }
 0x29a   :  { %v638_v56 = vmul.f32 %v1581_v42, %v637_v37  ;;  %v681_v46 = vmul.f32 %v1585_v21, %v2349_v43  ;;  %vm686_vm10 = vweird.f32 %v1585_v21  ;;  %vm2393_vm11 = vmor %vm700_vm6, %vm701_vm9  ;;  %v674_v13 = vand.u32 2147483647, %v2321_v55 }
 0x29b   :  { %v654_v22 = vadd.f32 %v1579_v6, %v653_v27  ;;  %v697_v26 = vsub.f32 1.0, %v696_v44  ;;  %vm687_vm15 = vmor %vm685_vm13, %vm686_vm10  ;;  %v692_v1 = vor.u32 1.1754944e-38, %v691_v24  ;;  %vm705_vm0 = vcmp.eq.f32.partialorder %v704_v54, 8.507059e+37  ;;  %v1619_v27 = vld [vmem:[%s2545_s5 + $0x8] sm:$0xff] }
 0x29c   :  { %v639_v29 = vadd.f32 %v1581_v42, %v638_v56  ;;  %v682_v63 = vsub.f32 1.0, %v681_v46  ;;  %vm690_vm2 = vcmp.eq.f32.partialorder %v689_v35, 8.507059e+37  ;;  %vm675_vm3 = vcmp.eq.f32.partialorder %v674_v13, 8.507059e+37  ;;  %v1624_v13 = vld [vmem:[%s2545_s5 + $0x28] sm:$0xff] }
 0x29d   :  { %v658_v23 = vsel %vm657_vm7, %v1579_v6, %v654_v22  ;;  %v698_v19 = vmul.f32 %v1583_v28, %v697_v26  ;;  %v669_v6 = vadd.f32 %v2354_v7, %v668_v5 }
 0x29e   :  { %v663_v39 = vsel %vm2365_vm1, %v662_v59, %v658_v23  ;;  %v643_v11 = vsel %vm642_vm8, %v1581_v42, %v639_v29  ;;  %v683_v62 = vmul.f32 %v1585_v21, %v682_v63  ;;  %v676_v42 = vand.u32 2147483648, %v2321_v55  ;;  %vm672_vm1 = vmor %vm670_vm14, %vm671_vm12  ;;  %v1618_v55 = vld [vmem:[%s2545_s5 + $0x10] sm:$0xff]  ;;  %v1622_v23 = vld [vmem:[%s2545_s5 + $0x18] sm:$0xff] }
 0x29f   :  { %732 = vperm.xlu0 %1551, %v663_v39   ;;  %v648_v48 = vsel %vm2372_vm5, %v647_v40, %v643_v11  ;;  %v699_v12 = vadd.f32 %v1583_v28, %v698_v19  ;;  %v673_v10 = vsel %vm672_vm1, %v2354_v7, %v669_v6  ;;  %v1620_v7 = vld [vmem:[%s2545_s5] sm:$0xff] }
 0x2a0   :  { %727 = vperm.xlu1 %1549, %v648_v48   ;;  %v684_v61 = vadd.f32 %v1585_v21, %v683_v62  ;;  %v1621_v40 = vld [vmem:[%s2545_s5 + $0x20] sm:$0xff] }
 0x2a1   :  { %v703_v18 = vsel %vm2393_vm11, %v1583_v28, %v699_v12  ;;  %v677_v28 = vor.u32 1.1754944e-38, %v676_v42  ;;  %v1623_v42 = vld [vmem:[%s2545_s5 + $0x30] sm:$0xff] }
 0x2a2   :  { %v688_v20 = vsel %vm687_vm15, %v1585_v21, %v684_v61  ;;  %v708_v33 = vsel %vm705_vm0, %v707_v41, %v703_v18 }
 0x2a3   :  { %v693_v32 = vsel %vm690_vm2, %v692_v1, %v688_v20  ;;  %v678_v25 = vsel %vm675_vm3, %v677_v28, %v673_v10 }
 0x2a4   :  { %742 = vperm.xlu2 %1550, %v693_v32  }
 0x2a6   :  { %v1081_v37 = vpop.xlane.xlu0 %1080  ;;  %v1078_v43 = vpop.xlane.xlu1 %1077 }
 0x2a7   :  { %747 = vperm.xlu0 %1551, %v708_v33   ;;  %v1099_v9 = vadd.f32 %v1618_v55, %v1081_v37  ;;  %v1098_v59 = vadd.f32 %v1619_v27, %v1078_v43  ;;  %v1075_v44 = vpop.xlane.xlu2 %1074 }
 0x2a8   :  { %737 = vperm.xlu1 %1549, %v678_v25   ;;  %v1097_v21 = vadd.f32 %v1620_v7, %v1075_v44 }
 0x2a9   :  { %v1107_v56 = vsub.f32 0.0, %v1099_v9  ;;  %v1106_v50 = vsub.f32 0.0, %v1098_v59 }
 0x2aa   :  { %v1105_v22 = vsub.f32 0.0, %v1097_v21 }
 0x2ab   :  { %v1117_v26 = vmul.f32 1.442695, %v1107_v56  ;;  %v1115_v54 = vmul.f32 1.442695, %v1106_v50 }
 0x2ac   :  { %v1113_v46 = vmul.f32 1.442695, %v1105_v22 }
 0x2ad   :  { %1586 = vpow2.f32 %v1117_v26 }
 0x2ae   :  { %1588 = vpow2.f32 %v1115_v54  ;;  %v1087_v29 = vpop.xlane.xlu1 %1086 }
 0x2af   :  { %1590 = vpow2.f32 %v1113_v46  ;;  %v1101_v4 = vadd.f32 %v1621_v40, %v1087_v29  ;;  %v1084_v5 = vpop.xlane.xlu2 %1083 }
 0x2b0   :  { %v1100_v19 = vadd.f32 %v1622_v23, %v1084_v5 }
 0x2b1   :  { %v1109_v63 = vsub.f32 0.0, %v1101_v4  ;;  %v1625_v4 = vld [vmem:[%s2545_s5 + $0x38] sm:$0xff]  ;;  %s1655_s5 = smov [#allocation2]  }
 0x2b2   :  { %v1108_v39 = vsub.f32 0.0, %v1100_v19  ;;  %s1334_s0 = sshll.u32 %s1655_s5, 4  ;;  %s1335_s0 = int_to_ptr.vmem [resolvable:$true] %s1334_s0 }
 0x2b3   :  { %v1587_v11 = vpop.eup %1586  ;;  %v1121_v35 = vmul.f32 1.442695, %v1109_v63 }
 0x2b4   :  { %v1589_v24 = vpop.eup %1588  ;;  %v2421_v48 = vadd.f32 1.0, %v1587_v11  ;;  %v1119_v58 = vmul.f32 1.442695, %v1108_v39 }
 0x2b5   :  { %v1591_v12 = vpop.eup %1590  ;;  %v2423_v62 = vadd.f32 1.0, %v1589_v24  ;;  %1592 = vpow2.f32 %v1121_v35 }
 0x2b6   :  { %1594 = vrcp.f32 %v2421_v48  ;;  %v2426_v6 = vadd.f32 1.0, %v1591_v12  ;;  %v1093_v18 = vpop.xlane.xlu1 %1092  ;;  %v1176_v33 = vand.u32 2147483647, %v2421_v48  ;;  %vm1172_vm4 = vweird.f32 %v2421_v48 }
 0x2b7   :  { %1596 = vrcp.f32 %v2423_v62  ;;  %v1103_v61 = vadd.f32 %v1623_v42, %v1093_v18  ;;  %v1090_v41 = vpop.xlane.xlu2 %1089  ;;  %v1161_v32 = vand.u32 2147483647, %v2423_v62  ;;  %v1163_v28 = vand.u32 2147483648, %v2423_v62 }
 0x2b8   :  { %1598 = vrcp.f32 %v2426_v6  ;;  %v1102_v1 = vadd.f32 %v1624_v13, %v1090_v41  ;;  %vm1157_vm5 = vweird.f32 %v2423_v62  ;;  %vm2444_vm6 = vcmp.eq.f32.partialorder %v1176_v33, 8.507059e+37 }
 0x2b9   :  { %1600 = vpow2.f32 %v1119_v58  ;;  %v1111_v20 = vsub.f32 0.0, %v1103_v61  ;;  %vm2450_vm7 = vcmp.eq.f32.partialorder %v1161_v32, 8.507059e+37  ;;  %v1164_v50 = vor.u32 1.1754944e-38, %v1163_v28 }
 0x2ba   :  { %v1110_v10 = vsub.f32 0.0, %v1102_v1  ;;  %v1178_v22 = vand.u32 2147483648, %v2421_v48  ;;  %vm1142_vm8 = vweird.f32 %v2426_v6  ;;  %v1146_v19 = vand.u32 2147483647, %v2426_v6 }
 0x2bb   :  { %v1593_v37 = vpop.eup %1592  ;;  %v1125_v43 = vmul.f32 1.442695, %v1111_v20  ;;  %v1148_v11 = vand.u32 2147483648, %v2426_v6 }
 0x2bc   :  { %v1595_v25 = vpop.eup %1594  ;;  %v2439_v55 = vadd.f32 1.0, %v1593_v37  ;;  %v1123_v9 = vmul.f32 1.442695, %v1110_v10  ;;  %v1179_v18 = vor.u32 1.1754944e-38, %v1178_v22  ;;  %vm2470_vm13 = vcmp.eq.f32.partialorder %v1146_v19, 8.507059e+37 }
 0x2bd   :  { %v1597_v27 = vpop.eup %1596  ;;  %1602 = vpow2.f32 %v1125_v43  ;;  %v1168_v59 = vmul.f32 %v1595_v25, %v2421_v48  ;;  %vm1173_vm9 = vweird.f32 %v1595_v25  ;;  %v1149_v28 = vor.u32 1.1754944e-38, %v1148_v11 }
 0x2be   :  { %v1599_v7 = vpop.eup %1598  ;;  %1604 = vrcp.f32 %v2439_v55  ;;  %v1153_v21 = vmul.f32 %v1597_v27, %v2423_v62  ;;  %vm1158_vm10 = vweird.f32 %v1597_v27  ;;  %vm1174_vm12 = vmor %vm1172_vm4, %vm1173_vm9  ;;  %v1206_v44 = vand.u32 2147483647, %v2439_v55 }
 0x2bf   :  { %v1601_v26 = vpop.eup %1600  ;;  %1606 = vpow2.f32 %v1123_v9  ;;  %v1096_v54 = vpop.xlane.xlu2 %1095  ;;  %v1169_v46 = vsub.f32 1.0, %v1168_v59  ;;  %v1138_v29 = vmul.f32 %v1599_v7, %v2426_v6  ;;  %vm1143_vm11 = vweird.f32 %v1599_v7  ;;  %vm1159_vm14 = vmor %vm1157_vm5, %vm1158_vm10 }
 0x2c0   :  { %v2457_v40 = vadd.f32 1.0, %v1601_v26  ;;  %v1104_v5 = vadd.f32 %v1625_v4, %v1096_v54  ;;  %v1154_v23 = vsub.f32 1.0, %v1153_v21  ;;  %vm1144_vm15 = vmor %vm1142_vm8, %vm1143_vm11  ;;  %v1208_v22 = vand.u32 2147483648, %v2439_v55 }
 0x2c1   :  { %v1170_v63 = vmul.f32 %v1595_v25, %v1169_v46  ;;  %v1139_v39 = vsub.f32 1.0, %v1138_v29  ;;  %vm1202_vm1 = vweird.f32 %v2439_v55  ;;  %vm1207_vm3 = vcmp.eq.f32.partialorder %v1206_v44, 8.507059e+37 }
 0x2c2   :  { %1608 = vrcp.f32 %v2457_v40  ;;  %v1112_v35 = vsub.f32 0.0, %v1104_v5  ;;  %v1155_v24 = vmul.f32 %v1597_v27, %v1154_v23  ;;  %v1209_v54 = vor.u32 1.1754944e-38, %v1208_v22 }
 0x2c3   :  { %v1603_v12 = vpop.eup %1602  ;;  %v1171_v58 = vadd.f32 %v1595_v25, %v1170_v63  ;;  %v1140_v42 = vmul.f32 %v1599_v7, %v1139_v39  ;;  %v1191_v46 = vand.u32 2147483647, %v2457_v40  ;;  %v1193_v29 = vand.u32 2147483648, %v2457_v40 }
 0x2c4   :  { %v1605_v61 = vpop.eup %1604  ;;  %v2465_v41 = vadd.f32 1.0, %v1603_v12  ;;  %v1127_v13 = vmul.f32 1.442695, %v1112_v35  ;;  %v1156_v1 = vadd.f32 %v1597_v27, %v1155_v24  ;;  %vm1187_vm5 = vweird.f32 %v2457_v40 }
 0x2c5   :  { %v1607_v33 = vpop.eup %1606  ;;  %v1175_v10 = vsel %vm1174_vm12, %v1595_v25, %v1171_v58  ;;  %v1141_v32 = vadd.f32 %v1599_v7, %v1140_v42  ;;  %v1198_v37 = vmul.f32 %v1605_v61, %v2439_v55  ;;  %vm1203_vm0 = vweird.f32 %v1605_v61 }
 0x2c6   :  { %1610 = vrcp.f32 %v2465_v41  ;;  %v2478_v43 = vadd.f32 1.0, %v1607_v33  ;;  %v1160_v9 = vsel %vm1159_vm14, %v1597_v27, %v1156_v1  ;;  %v1180_v48 = vsel %vm2444_vm6, %v1179_v18, %v1175_v10  ;;  %vm1204_vm2 = vmor %vm1202_vm1, %vm1203_vm0 }
 0x2c7   :  { %1612 = vpow2.f32 %v1127_v13  ;;  %v1165_v62 = vsel %vm2450_vm7, %v1164_v50, %v1160_v9  ;;  %1269 = vperm.xlu2 %1550, %v1180_v48   ;;  %v1145_v25 = vsel %vm1144_vm15, %v1599_v7, %v1141_v32  ;;  %v1199_v59 = vsub.f32 1.0, %v1198_v37 }
 0x2c8   :  { %v1609_v21 = vpop.eup %1608  ;;  %1614 = vrcp.f32 %v2478_v43  ;;  %1264 = vperm.xlu0 %1551, %v1165_v62   ;;  %v1150_v27 = vsel %vm2470_vm13, %v1149_v28, %v1145_v25  ;;  %vm1192_vm7 = vcmp.eq.f32.partialorder %v1191_v46, 8.507059e+37  ;;  %v1194_v12 = vor.u32 1.1754944e-38, %v1193_v29 }
 0x2c9   :  { %1259 = vperm.xlu1 %1549, %v1150_v27   ;;  %v1200_v6 = vmul.f32 %v1605_v61, %v1199_v59  ;;  %v1183_v56 = vmul.f32 %v1609_v21, %v2457_v40  ;;  %vm1188_vm4 = vweird.f32 %v1609_v21  ;;  %vm1232_vm8 = vweird.f32 %v2465_v41 }
 0x2ca   :  { %vm1189_vm6 = vmor %vm1187_vm5, %vm1188_vm4  ;;  %v1236_v13 = vand.u32 2147483647, %v2465_v41  ;;  %v1238_v1 = vand.u32 2147483648, %v2465_v41  ;;  %v1223_v40 = vand.u32 2147483648, %v2478_v43  ;;  %v1221_v10 = vand.u32 2147483647, %v2478_v43 }
 0x2cb   :  { %v1201_v50 = vadd.f32 %v1605_v61, %v1200_v6  ;;  %v1184_v7 = vsub.f32 1.0, %v1183_v56  ;;  %vm1217_vm12 = vweird.f32 %v2478_v43 }
 0x2cc   :  { %v1611_v26 = vpop.eup %1610  ;;  %v1239_v9 = vor.u32 1.1754944e-38, %v1238_v1  ;;  %v1224_v48 = vor.u32 1.1754944e-38, %v1223_v40  ;;  %vm1237_vm14 = vcmp.eq.f32.partialorder %v1236_v13, 8.507059e+37  ;;  %vm1222_vm15 = vcmp.eq.f32.partialorder %v1221_v10, 8.507059e+37 }
 0x2cd   :  { %v1613_v4 = vpop.eup %1612  ;;  %v1205_v5 = vsel %vm1204_vm2, %v1605_v61, %v1201_v50  ;;  %v1185_v23 = vmul.f32 %v1609_v21, %v1184_v7  ;;  %v1228_v19 = vmul.f32 %v1611_v26, %v2465_v41  ;;  %vm1233_vm9 = vweird.f32 %v1611_v26 }
 0x2ce   :  { %v1615_v63 = vpop.eup %1614  ;;  %v1136_v39 = vadd.f32 1.0, %v1613_v4  ;;  %v1210_v11 = vsel %vm1207_vm3, %v1209_v54, %v1205_v5  ;;  %vm1234_vm11 = vmor %vm1232_vm8, %vm1233_vm9 }
 0x2cf   :  { %v1186_v35 = vadd.f32 %v1609_v21, %v1185_v23  ;;  %v1229_v55 = vsub.f32 1.0, %v1228_v19  ;;  %v1213_v24 = vmul.f32 %v1615_v63, %v2478_v43  ;;  %vm1218_vm10 = vweird.f32 %v1615_v63 }
 0x2d0   :  { %1616 = vrcp.f32 %v1136_v39  ;;  %1279 = vperm.xlu0 %1551, %v1210_v11   ;;  %vm1219_vm13 = vmor %vm1217_vm12, %vm1218_vm10  ;;  %v1253_v27 = vand.u32 2147483648, %v1136_v39  ;;  %v1251_v22 = vand.u32 2147483647, %v1136_v39  ;;  %vm1247_vm1 = vweird.f32 %v1136_v39 }
 0x2d1   :  { %v1190_v58 = vsel %vm1189_vm6, %v1609_v21, %v1186_v35  ;;  %v1230_v18 = vmul.f32 %v1611_v26, %v1229_v55  ;;  %v1214_v42 = vsub.f32 1.0, %v1213_v24 }
 0x2d2   :  { %v1195_v61 = vsel %vm1192_vm7, %v1194_v12, %v1190_v58  ;;  %v1254_v43 = vor.u32 1.1754944e-38, %v1253_v27  ;;  %vm1252_vm3 = vcmp.eq.f32.partialorder %v1251_v22, 8.507059e+37  ;;  %v2591_v22 = vld [vmem:[#allocation8_spill] sm:$0xff] }
 0x2d3   :  { %1274 = vperm.xlu1 %1549, %v1195_v61   ;;  %v1231_v20 = vadd.f32 %v1611_v26, %v1230_v18  ;;  %v1215_v33 = vmul.f32 %v1615_v63, %v1214_v42 }
 0x2d5   :  { %v1235_v32 = vsel %vm1234_vm11, %v1611_v26, %v1231_v20  ;;  %v1216_v28 = vadd.f32 %v1615_v63, %v1215_v33 }
 0x2d6   :  { %v1617_v37 = vpop.eup %1616  ;;  %v1240_v25 = vsel %vm1237_vm14, %v1239_v9, %v1235_v32  ;;  %v2586_v32 = vld [vmem:[#allocation7_spill] sm:$0xff]  ;;  %v2587_v9 = vld [vmem:[#allocation5_spill] sm:$0xff] }
 0x2d7   :  { %v1220_v62 = vsel %vm1219_vm13, %v1615_v63, %v1216_v28  ;;  %v1243_v41 = vmul.f32 %v1617_v37, %v1136_v39  ;;  %vm1248_vm0 = vweird.f32 %v1617_v37 }
 0x2d8   :  { %v1225_v59 = vsel %vm1222_vm15, %v1224_v48, %v1220_v62  ;;  %vm1249_vm2 = vmor %vm1247_vm1, %vm1248_vm0 }
 0x2d9   :  { %1284 = vperm.xlu2 %1550, %v1225_v59   ;;  %v1244_v21 = vsub.f32 1.0, %v1243_v41 }
 0x2db   :  { %1289 = vperm.xlu1 %1549, %v1240_v25   ;;  %v1245_v44 = vmul.f32 %v1617_v37, %v1244_v21 }
 0x2dd   :  { %v1246_v6 = vadd.f32 %v1617_v37, %v1245_v44 }
 0x2df   :  { %v1250_v56 = vsel %vm1249_vm2, %v1617_v37, %v1246_v6  ;;  %v2592_v6 = vld [vmem:[#allocation9_spill] sm:$0xff] }
 0x2e0   :  { %v1255_v50 = vsel %vm1252_vm3, %v1254_v43, %v1250_v56 }
 0x2e1   :  { %1294 = vperm.xlu0 %1551, %v1255_v50  }
 0x2ee   :  { %v718_v7 = vpop.permute.xlu2 %717 }
 0x2ef   :  { %v752_v26 = vmul.f32 %v718_v7, %v2070_v8  ;;  %v753_v54 = vmul.f32 %v718_v7, %v2074_v38  ;;  %v2593_v7 = vld [vmem:[#allocation12_spill] sm:$0xff] }
 0x2f1   :  { %v767_v46 = vpack.c.bf16 %v753_v54, %v752_v26  ;;  %v2594_v54 = vld [vmem:[#allocation13_spill] sm:$0xff] }
 0x2f3   :  { %775 = vst [vmem:[#allocation2 + $0x8] sm:$0xff] %v767_v46 }
 0x2fe   :  { %v743_v29 = vpop.permute.xlu2 %742 }
 0x2ff   :  { %v762_v4 = vmul.f32 %v743_v29, %v2043_v36  ;;  %v763_v5 = vmul.f32 %v743_v29, %v2040_v14 }
 0x301   :  { %v772_v23 = vpack.c.bf16 %v763_v5, %v762_v4  ;;  %v2595_v5 = vld [vmem:[#allocation14_spill] sm:$0xff] }
 0x303   :  { %780 = vst [vmem:[#allocation2 + $0x30] sm:$0xff] %v772_v23 }
 0x305   :  { %v723_v19 = vpop.permute.xlu0 %722 }
 0x306   :  { %v754_v63 = vmul.f32 %v723_v19, %v1995_v53  ;;  %v755_v39 = vmul.f32 %v723_v19, %v1992_v52  ;;  %v2596_v19 = vld [vmem:[#allocation15_spill] sm:$0xff] }
 0x307   :  { %v713_v11 = vpop.permute.xlu1 %712 }
 0x308   :  { %v768_v35 = vpack.c.bf16 %v755_v39, %v754_v63  ;;  %v750_v8 = vmul.f32 %v713_v11, %v2060_v57  ;;  %v751_v38 = vmul.f32 %v713_v11, %v2064_v60 }
 0x30a   :  { %776 = vst [vmem:[#allocation2 + $0x10] sm:$0xff] %v768_v35  ;;  %v766_v55 = vpack.c.bf16 %v751_v38, %v750_v8 }
 0x30c   :  { %774 = vst [vmem:[#allocation2] sm:$0xff] %v766_v55 }
 0x311   :  { %v733_v24 = vpop.permute.xlu0 %732 }
 0x312   :  { %v758_v36 = vmul.f32 %v733_v24, %v2019_v17  ;;  %v759_v14 = vmul.f32 %v733_v24, %v2016_v15  ;;  %v728_v12 = vpop.permute.xlu1 %727 }
 0x313   :  { %v756_v58 = vmul.f32 %v728_v12, %v2006_v2  ;;  %v757_v53 = vmul.f32 %v728_v12, %v2003_v0 }
 0x314   :  { %v770_v52 = vpack.c.bf16 %v759_v14, %v758_v36 }
 0x315   :  { %v769_v18 = vpack.c.bf16 %v757_v53, %v756_v58 }
 0x316   :  { %778 = vst [vmem:[#allocation2 + $0x20] sm:$0xff] %v770_v52 }
 0x317   :  { %777 = vst [vmem:[#allocation2 + $0x18] sm:$0xff] %v769_v18 }
 0x319   :  { %v748_v57 = vpop.permute.xlu0 %747 }
 0x31a   :  { %v764_v60 = vmul.f32 %v748_v57, %v2054_v47  ;;  %v765_v42 = vmul.f32 %v748_v57, %v2051_v45  ;;  %v738_v61 = vpop.permute.xlu1 %737 }
 0x31b   :  { %v760_v13 = vmul.f32 %v738_v61, %v2032_v31  ;;  %v761_v17 = vmul.f32 %v738_v61, %v2029_v30 }
 0x31c   :  { %v773_v15 = vpack.c.bf16 %v765_v42, %v764_v60 }
 0x31d   :  { %v771_v1 = vpack.c.bf16 %v761_v17, %v760_v13 }
 0x31e   :  { %781 = vst [vmem:[#allocation2 + $0x38] sm:$0xff] %v773_v15 }
 0x31f   :  { %779 = vst [vmem:[#allocation2 + $0x28] sm:$0xff] %v771_v1 }
 0x321   :  { %v1270_v2 = vpop.permute.xlu2 %1269 }
 0x322   :  { %v1301_v0 = vmul.f32 %v1270_v2, %v2095_v49  ;;  %v1302_v40 = vmul.f32 %v1270_v2, %v2098_v51  ;;  %v2588_v49 = vld [vmem:[#allocation6_spill] sm:$0xff] }
 0x324   :  { %v1315_v20 = vpack.c.bf16 %v1302_v40, %v1301_v0 }
 0x326   :  { %1324 = vst [vmem:[#allocation2 + $0x50] sm:$0xff] %v1315_v20 }
 0x333   :  { %v1285_v33 = vpop.permute.xlu2 %1284 }
 0x334   :  { %v1307_v47 = vmul.f32 %v1285_v33, %v2119_v16  ;;  %v1308_v45 = vmul.f32 %v1285_v33, %v2122_v3  ;;  %v2589_v16 = vld [vmem:[#allocation10_spill] sm:$0xff]  ;;  %v2590_v3 = vld [vmem:[#allocation11_spill] sm:$0xff] }
 0x336   :  { %v1318_v10 = vpack.c.bf16 %v1308_v45, %v1307_v47 }
 0x338   :  { %1327 = vst [vmem:[#allocation2 + $0x68] sm:$0xff] %v1318_v10 }
 0x33a   :  { %v1265_v31 = vpop.permute.xlu0 %1264 }
 0x33b   :  { %v1299_v30 = vmul.f32 %v1265_v31, %v2087_v34  ;;  %v1300_v28 = vmul.f32 %v1265_v31, %v2586_v32  ;;  %v1260_v37 = vpop.permute.xlu1 %1259 }
 0x33c   :  { %v1297_v48 = vmul.f32 %v1260_v37, %v2587_v9  ;;  %v1298_v62 = vmul.f32 %v1260_v37, %v2588_v49 }
 0x33d   :  { %v1314_v51 = vpack.c.bf16 %v1300_v28, %v1299_v30 }
 0x33e   :  { %v1313_v41 = vpack.c.bf16 %v1298_v62, %v1297_v48 }
 0x33f   :  { %1323 = vst [vmem:[#allocation2 + $0x48] sm:$0xff] %v1314_v51 }
 0x340   :  { %1322 = vst [vmem:[#allocation2 + $0x40] sm:$0xff] %v1313_v41 }
 0x342   :  { %v1280_v25 = vpop.permute.xlu0 %1279 }
 0x343   :  { %v1305_v59 = vmul.f32 %v1280_v25, %v2589_v16  ;;  %v1306_v21 = vmul.f32 %v1280_v25, %v2590_v3 }
 0x345   :  { %v1317_v27 = vpack.c.bf16 %v1306_v21, %v1305_v59  ;;  %v1275_v44 = vpop.permute.xlu1 %1274 }
 0x346   :  { %v1303_v34 = vmul.f32 %v1275_v44, %v2591_v22  ;;  %v1304_v43 = vmul.f32 %v1275_v44, %v2592_v6 }
 0x347   :  { %1326 = vst [vmem:[#allocation2 + $0x60] sm:$0xff] %v1317_v27 }
 0x348   :  { %v1316_v56 = vpack.c.bf16 %v1304_v43, %v1303_v34 }
 0x34a   :  { %1325 = vst [vmem:[#allocation2 + $0x58] sm:$0xff] %v1316_v56 }
 0x34d   :  { %v1290_v50 = vpop.permute.xlu1 %1289 }
 0x34e   :  { %v1309_v26 = vmul.f32 %v1290_v50, %v2593_v7  ;;  %v1310_v46 = vmul.f32 %v1290_v50, %v2594_v54 }
 0x350   :  { %v1319_v29 = vpack.c.bf16 %v1310_v46, %v1309_v26 }
 0x352   :  { %1328 = vst [vmem:[#allocation2 + $0x70] sm:$0xff] %v1319_v29 }
 0x353   :  { %v1295_v4 = vpop.permute.xlu0 %1294 }
 0x354   :  { %v1311_v23 = vmul.f32 %v1295_v4, %v2595_v5  ;;  %v1312_v63 = vmul.f32 %v1295_v4, %v2596_v19 }
 0x356   :  { %v1320_v39 = vpack.c.bf16 %v1312_v63, %v1311_v23 }
 0x358   :  { %1329 = vst [vmem:[#allocation2 + $0x78] sm:$0xff] %v1320_v39 }
 0x359   :  { %1342 = dma.vmem_to_hbm [thread:$0]  %s1335_s0, 2048, %s1337_s7, [#allocation3], %s1656_s1, %s1656_s1, %s1657_s3  }
 0x35a   :  { %1650 = dma.done.wait [#allocation3], 2048  }
 0x35b   :  { %1651 = vsyncadd [#allocation3], 4294965248 }
 0x35c   :  { %1347 = vsyncpa [#allocation3], 1 }

</bundles_post_ra>
